<compile_context>
chip_gen: v7x
topology: tpu7x:2x2x1
jax: 0.10.0
libtpu: 0.0.40
codegen_flags: <defaults>
</compile_context>

<pallas_src>
import functools

import jax
import jax.numpy as jnp
from jax.experimental import pallas as pl
from jax.experimental.pallas import tpu as pltpu


def _silu(v):
    # silu(x) = x * sigmoid(x) = x / (1 + exp(-x)); exp runs on the EUP.
    return v / (1.0 + jnp.exp(-v))


def _resblock1_kernel(x_ref, w1_ref, b1_ref, w2_ref, b2_ref, o_ref, *,
                      kernel_size, dilations):
    """One batch element per grid step.

    x_ref / o_ref : (1, C, L)          (L on the lane axis, C on sublanes)
    w1_ref/w2_ref : (n*K, C_out, C_in) (tap k of conv-pair i at row i*K + k)
    b1_ref/b2_ref : (n, C, 1)
    """
    K = kernel_size
    c = x_ref.shape[1]
    l = x_ref.shape[2]

    x = x_ref[0].astype(jnp.float32)                       # (C, L)
    lane = jax.lax.broadcasted_iota(jnp.int32, (c, l), 1)  # lane index, hoisted

    w1 = w1_ref[...].astype(jnp.float32)
    w2 = w2_ref[...].astype(jnp.float32)
    b1 = b1_ref[...].astype(jnp.float32)
    b2 = b2_ref[...].astype(jnp.float32)

    def causal_dilated_conv(h, w_taps, b, d):
        # h: (C, L); w_taps: (K, C_out, C_in); b: (C, 1)
        # y[:, t] = b + sum_k w_taps[k] @ h[:, t - (K-1-k)*d]   (zeros for t<0)
        acc = None
        for k in range(K):
            s = (K - 1 - k) * d
            if s == 0:
                shifted = h
            else:
                shifted = jnp.where(lane >= s,
                                    pltpu.roll(h, shift=s, axis=1),
                                    0.0)
            term = jnp.dot(w_taps[k], shifted,
                           preferred_element_type=jnp.float32)
            acc = term if acc is None else acc + term
        return acc + b

    h = x
    for i, d in enumerate(dilations):
        t = _silu(h)
        t = causal_dilated_conv(t, w1[i * K:(i + 1) * K], b1[i], d)
        t = _silu(t)
        t = causal_dilated_conv(t, w2[i * K:(i + 1) * K], b2[i], d)
        h = t + h

    o_ref[0] = h.astype(o_ref.dtype)


def resblock1_forward(x, w1, b1, w2, b2, dilations=(1, 3, 5)):
    """Fused ResBlock1 forward.

    x  : (B, C, L) float32
    w1, w2 : (n, C, C, K) effective (post weight-norm) Conv1d weights in
             PyTorch (out, in, K) layout, stacked over the n conv pairs.
    b1, b2 : (n, C) biases.
    Returns (B, C, L).
    """
    B, C, L = x.shape
    n, c_out, c_in, K = w1.shape
    assert (c_out, c_in) == (C, C) and w2.shape == w1.shape
    assert n == len(dilations) and b1.shape == (n, C) and b2.shape == (n, C)

    # (n, C_out, C_in, K) -> (n*K, C_out, C_in): tap k of pair i at row i*K + k.
    w1k = jnp.transpose(w1, (0, 3, 1, 2)).reshape(n * K, C, C)
    w2k = jnp.transpose(w2, (0, 3, 1, 2)).reshape(n * K, C, C)
    b1k = b1.reshape(n, C, 1)
    b2k = b2.reshape(n, C, 1)

    kernel = functools.partial(
        _resblock1_kernel,
        kernel_size=int(K),
        dilations=tuple(int(d) for d in dilations),
    )

    # TODO(synk): for very long L (per-batch block > a few MiB) add an L-tile
    # grid axis that carries the (K-1)*d causal context of each conv in VMEM
    # scratch instead of holding the full sequence resident.
    return pl.pallas_call(
        kernel,
        out_shape=jax.ShapeDtypeStruct((B, C, L), x.dtype),
        grid_spec=pltpu.PrefetchScalarGridSpec(
            num_scalar_prefetch=0,
            grid=(B,),
            in_specs=[
                pl.BlockSpec((1, C, L), lambda b: (b, 0, 0)),
                pl.BlockSpec((n * K, C, C), lambda b: (0, 0, 0)),
                pl.BlockSpec((n, C, 1), lambda b: (0, 0, 0)),
                pl.BlockSpec((n * K, C, C), lambda b: (0, 0, 0)),
                pl.BlockSpec((n, C, 1), lambda b: (0, 0, 0)),
            ],
            out_specs=pl.BlockSpec((1, C, L), lambda b: (b, 0, 0)),
        ),
        compiler_params=pltpu.CompilerParams(
            dimension_semantics=("parallel",),   # shard batch on v7x's 2 TCs
            vmem_limit_bytes=32 * 1024 * 1024,   # explicit, safe on v5e/v6e/v7x
        ),
    )(x, w1k, b1k, w2k, b2k)


# ------------------------- pure-JAX reference -------------------------------

def _ref_pine_conv(x, w, b, d):
    """PineConvNet.forward (stride=1): left pad (K-1)*d zeros, dilated Conv1d."""
    K = w.shape[-1]
    pad = (K - 1) * d
    xp = jnp.pad(x, ((0, 0), (0, 0), (pad, 0)))
    y = jax.lax.conv_general_dilated(
        xp, w, window_strides=(1,), padding="VALID", rhs_dilation=(d,),
        dimension_numbers=("NCH", "OIH", "NCH"),
        precision=jax.lax.Precision.HIGHEST)
    return y + b[None, :, None]


def _ref_resblock1(x, w1, b1, w2, b2, dilations=(1, 3, 5)):
    for i, d in enumerate(dilations):
        t = jax.nn.silu(x)
        t = _ref_pine_conv(t, w1[i], b1[i], d)
        t = jax.nn.silu(t)
        t = _ref_pine_conv(t, w2[i], b2[i], d)
        x = t + x
    return x


if __name__ == "__main__":
    key = jax.random.PRNGKey(0)
    k = jax.random.split(key, 7)

    B, C, L, K = 2, 32, 256, 3
    dilations = (1, 3, 5)
    n = len(dilations)

    x = jax.random.normal(k[0], (B, C, L), dtype=jnp.float32)

    # weight_norm parametrization w = g * v / ||v|| (norm over (in, K) per out
    # channel, i.e. dim=0).  Parameter-side math, done in plain JAX.
    def wn_weights(kv, kg):
        v = 0.05 * jax.random.normal(kv, (n, C, C, K), dtype=jnp.float32)
        g = 0.6 + 0.1 * jax.random.normal(kg, (n, C, 1, 1), dtype=jnp.float32)
        norm = jnp.sqrt(jnp.sum(v * v, axis=(2, 3), keepdims=True))
        return g * v / norm

    w1 = wn_weights(k[1], k[2])
    w2 = wn_weights(k[3], k[4])
    b1 = 0.1 * jax.random.normal(k[5], (n, C), dtype=jnp.float32)
    b2 = 0.1 * jax.random.normal(k[6], (n, C), dtype=jnp.float32)

    fwd = jax.jit(resblock1_forward)
    y = jax.block_until_ready(fwd(x, w1, b1, w2, b2))

    y_ref = _ref_resblock1(x, w1, b1, w2, b2, dilations)
    assert y.shape == (B, C, L)
    # Loose-ish tolerance: covers MXU f32-vs-bf16-pass rounding differences while
    # remaining far below any semantic error (shift/dilation/residual bugs are O(0.1+)).
    assert jnp.allclose(y, y_ref, atol=2e-2, rtol=2e-2), \
        float(jnp.max(jnp.abs(y - y_ref)))

    print("KERNEL_OK")
</pallas_src>

<mosaic_0001>
module attributes {stable_mosaic.version = 11 : i64} {
  func.func @_resblock1_kernel(%arg0: i32, %arg1: memref<1x32x256xf32, #tpu.memory_space<vmem>>, %arg2: memref<9x32x32xf32, #tpu.memory_space<vmem>>, %arg3: memref<3x32x1xf32, #tpu.memory_space<vmem>>, %arg4: memref<9x32x32xf32, #tpu.memory_space<vmem>>, %arg5: memref<3x32x1xf32, #tpu.memory_space<vmem>>, %arg6: memref<1x32x256xf32, #tpu.memory_space<vmem>>) attributes {dimension_semantics = [#tpu.dimension_semantics<parallel>], iteration_bounds = array<i64: 2>, scalar_prefetch = 0 : i64, scratch_operands = 0 : i64, tpu.core_type = #tpu.core_type<tc>, window_params = [{transform_indices = @transform_0, window_bounds = array<i64: 1, 32, 256>}, {pipeline_mode = #tpu.pipeline_mode<synchronous>, transform_indices = @transform_1, window_bounds = array<i64: 9, 32, 32>}, {pipeline_mode = #tpu.pipeline_mode<synchronous>, transform_indices = @transform_2, window_bounds = array<i64: 3, 32, 1>}, {pipeline_mode = #tpu.pipeline_mode<synchronous>, transform_indices = @transform_3, window_bounds = array<i64: 9, 32, 32>}, {pipeline_mode = #tpu.pipeline_mode<synchronous>, transform_indices = @transform_4, window_bounds = array<i64: 3, 32, 1>}, {transform_indices = @transform_5, window_bounds = array<i64: 1, 32, 256>}]} {
    %c0 = arith.constant 0 : index
    %c0_0 = arith.constant 0 : index
    %c0_1 = arith.constant 0 : index
    %0 = vector.load %arg1[%c0, %c0_0, %c0_1] : memref<1x32x256xf32, #tpu.memory_space<vmem>>, vector<1x32x256xf32>
    %1 = vector.shape_cast %0 : vector<1x32x256xf32> to vector<32x256xf32>
    %2 = tpu.iota {dimensions = array<i32: 1>} : vector<32x256xi32>
    %c0_2 = arith.constant 0 : index
    %c0_3 = arith.constant 0 : index
    %c0_4 = arith.constant 0 : index
    %3 = vector.load %arg2[%c0_2, %c0_3, %c0_4] : memref<9x32x32xf32, #tpu.memory_space<vmem>>, vector<9x32x32xf32>
    %c0_5 = arith.constant 0 : index
    %c0_6 = arith.constant 0 : index
    %c0_7 = arith.constant 0 : index
    %4 = vector.load %arg4[%c0_5, %c0_6, %c0_7] : memref<9x32x32xf32, #tpu.memory_space<vmem>>, vector<9x32x32xf32>
    %c0_8 = arith.constant 0 : index
    %c0_9 = arith.constant 0 : index
    %c0_10 = arith.constant 0 : index
    %5 = vector.load %arg3[%c0_8, %c0_9, %c0_10] : memref<3x32x1xf32, #tpu.memory_space<vmem>>, vector<3x32x1xf32>
    %c0_11 = arith.constant 0 : index
    %c0_12 = arith.constant 0 : index
    %c0_13 = arith.constant 0 : index
    %6 = vector.load %arg5[%c0_11, %c0_12, %c0_13] : memref<3x32x1xf32, #tpu.memory_space<vmem>>, vector<3x32x1xf32>
    %cst = arith.constant 0.000000e+00 : f32
    %7 = vector.broadcast %cst : f32 to vector<32x256xf32>
    %8 = arith.subf %7, %1 : vector<32x256xf32>
    %9 = math.exp %8 : vector<32x256xf32>
    %cst_14 = arith.constant 1.000000e+00 : f32
    %10 = vector.broadcast %cst_14 : f32 to vector<32x256xf32>
    %11 = arith.addf %10, %9 : vector<32x256xf32>
    %12 = arith.divf %1, %11 : vector<32x256xf32>
    %13 = vector.extract_strided_slice %3 {offsets = [0, 0, 0], sizes = [3, 32, 32], strides = [1, 1, 1]} : vector<9x32x32xf32> to vector<3x32x32xf32>
    %14 = vector.extract_strided_slice %5 {offsets = [0, 0, 0], sizes = [1, 32, 1], strides = [1, 1, 1]} : vector<3x32x1xf32> to vector<1x32x1xf32>
    %15 = vector.shape_cast %14 : vector<1x32x1xf32> to vector<32x1xf32>
    %c2_i32 = arith.constant 2 : i32
    %16 = vector.broadcast %c2_i32 : i32 to vector<32x256xi32>
    %17 = arith.cmpi sge, %2, %16 : vector<32x256xi32>
    %c2_i32_15 = arith.constant 2 : i32
    %18 = tpu.dynamic_rotate %12 by %c2_i32_15 dim 1 : vector<32x256xf32>, i32 -> vector<32x256xf32>
    %cst_16 = arith.constant 0.000000e+00 : f32
    %19 = vector.broadcast %cst_16 : f32 to vector<32x256xf32>
    %20 = arith.select %17, %18, %19 : vector<32x256xi1>, vector<32x256xf32>
    %21 = vector.extract_strided_slice %13 {offsets = [0, 0, 0], sizes = [1, 32, 32], strides = [1, 1, 1]} : vector<3x32x32xf32> to vector<1x32x32xf32>
    %22 = vector.shape_cast %21 : vector<1x32x32xf32> to vector<32x32xf32>
    %cst_17 = arith.constant dense<0.000000e+00> : vector<32x256xf32>
    %23 = tpu.matmul %22, %20, %cst_17 {dimension_numbers = #tpu.dot_dimension_numbers<[1], [0], [0], [1], [0, 0, 1, 1], [], []>} : vector<32x32xf32>, vector<32x256xf32>, vector<32x256xf32> -> vector<32x256xf32>
    %c1_i32 = arith.constant 1 : i32
    %24 = vector.broadcast %c1_i32 : i32 to vector<32x256xi32>
    %25 = arith.cmpi sge, %2, %24 : vector<32x256xi32>
    %c1_i32_18 = arith.constant 1 : i32
    %26 = tpu.dynamic_rotate %12 by %c1_i32_18 dim 1 : vector<32x256xf32>, i32 -> vector<32x256xf32>
    %cst_19 = arith.constant 0.000000e+00 : f32
    %27 = vector.broadcast %cst_19 : f32 to vector<32x256xf32>
    %28 = arith.select %25, %26, %27 : vector<32x256xi1>, vector<32x256xf32>
    %29 = vector.extract_strided_slice %13 {offsets = [1, 0, 0], sizes = [1, 32, 32], strides = [1, 1, 1]} : vector<3x32x32xf32> to vector<1x32x32xf32>
    %30 = vector.shape_cast %29 : vector<1x32x32xf32> to vector<32x32xf32>
    %cst_20 = arith.constant dense<0.000000e+00> : vector<32x256xf32>
    %31 = tpu.matmul %30, %28, %cst_20 {dimension_numbers = #tpu.dot_dimension_numbers<[1], [0], [0], [1], [0, 0, 1, 1], [], []>} : vector<32x32xf32>, vector<32x256xf32>, vector<32x256xf32> -> vector<32x256xf32>
    %32 = arith.addf %23, %31 : vector<32x256xf32>
    %33 = vector.extract_strided_slice %13 {offsets = [2, 0, 0], sizes = [1, 32, 32], strides = [1, 1, 1]} : vector<3x32x32xf32> to vector<1x32x32xf32>
    %34 = vector.shape_cast %33 : vector<1x32x32xf32> to vector<32x32xf32>
    %cst_21 = arith.constant dense<0.000000e+00> : vector<32x256xf32>
    %35 = tpu.matmul %34, %12, %cst_21 {dimension_numbers = #tpu.dot_dimension_numbers<[1], [0], [0], [1], [0, 0, 1, 1], [], []>} : vector<32x32xf32>, vector<32x256xf32>, vector<32x256xf32> -> vector<32x256xf32>
    %36 = arith.addf %32, %35 : vector<32x256xf32>
    %37 = vector.broadcast %15 : vector<32x1xf32> to vector<32x256xf32>
    %38 = arith.addf %36, %37 : vector<32x256xf32>
    %cst_22 = arith.constant 0.000000e+00 : f32
    %39 = vector.broadcast %cst_22 : f32 to vector<32x256xf32>
    %40 = arith.subf %39, %38 : vector<32x256xf32>
    %41 = math.exp %40 : vector<32x256xf32>
    %cst_23 = arith.constant 1.000000e+00 : f32
    %42 = vector.broadcast %cst_23 : f32 to vector<32x256xf32>
    %43 = arith.addf %42, %41 : vector<32x256xf32>
    %44 = arith.divf %38, %43 : vector<32x256xf32>
    %45 = vector.extract_strided_slice %4 {offsets = [0, 0, 0], sizes = [3, 32, 32], strides = [1, 1, 1]} : vector<9x32x32xf32> to vector<3x32x32xf32>
    %46 = vector.extract_strided_slice %6 {offsets = [0, 0, 0], sizes = [1, 32, 1], strides = [1, 1, 1]} : vector<3x32x1xf32> to vector<1x32x1xf32>
    %47 = vector.shape_cast %46 : vector<1x32x1xf32> to vector<32x1xf32>
    %c2_i32_24 = arith.constant 2 : i32
    %48 = vector.broadcast %c2_i32_24 : i32 to vector<32x256xi32>
    %49 = arith.cmpi sge, %2, %48 : vector<32x256xi32>
    %c2_i32_25 = arith.constant 2 : i32
    %50 = tpu.dynamic_rotate %44 by %c2_i32_25 dim 1 : vector<32x256xf32>, i32 -> vector<32x256xf32>
    %cst_26 = arith.constant 0.000000e+00 : f32
    %51 = vector.broadcast %cst_26 : f32 to vector<32x256xf32>
    %52 = arith.select %49, %50, %51 : vector<32x256xi1>, vector<32x256xf32>
    %53 = vector.extract_strided_slice %45 {offsets = [0, 0, 0], sizes = [1, 32, 32], strides = [1, 1, 1]} : vector<3x32x32xf32> to vector<1x32x32xf32>
    %54 = vector.shape_cast %53 : vector<1x32x32xf32> to vector<32x32xf32>
    %cst_27 = arith.constant dense<0.000000e+00> : vector<32x256xf32>
    %55 = tpu.matmul %54, %52, %cst_27 {dimension_numbers = #tpu.dot_dimension_numbers<[1], [0], [0], [1], [0, 0, 1, 1], [], []>} : vector<32x32xf32>, vector<32x256xf32>, vector<32x256xf32> -> vector<32x256xf32>
    %c1_i32_28 = arith.constant 1 : i32
    %56 = vector.broadcast %c1_i32_28 : i32 to vector<32x256xi32>
    %57 = arith.cmpi sge, %2, %56 : vector<32x256xi32>
    %c1_i32_29 = arith.constant 1 : i32
    %58 = tpu.dynamic_rotate %44 by %c1_i32_29 dim 1 : vector<32x256xf32>, i32 -> vector<32x256xf32>
    %cst_30 = arith.constant 0.000000e+00 : f32
    %59 = vector.broadcast %cst_30 : f32 to vector<32x256xf32>
    %60 = arith.select %57, %58, %59 : vector<32x256xi1>, vector<32x256xf32>
    %61 = vector.extract_strided_slice %45 {offsets = [1, 0, 0], sizes = [1, 32, 32], strides = [1, 1, 1]} : vector<3x32x32xf32> to vector<1x32x32xf32>
    %62 = vector.shape_cast %61 : vector<1x32x32xf32> to vector<32x32xf32>
    %cst_31 = arith.constant dense<0.000000e+00> : vector<32x256xf32>
    %63 = tpu.matmul %62, %60, %cst_31 {dimension_numbers = #tpu.dot_dimension_numbers<[1], [0], [0], [1], [0, 0, 1, 1], [], []>} : vector<32x32xf32>, vector<32x256xf32>, vector<32x256xf32> -> vector<32x256xf32>
    %64 = arith.addf %55, %63 : vector<32x256xf32>
    %65 = vector.extract_strided_slice %45 {offsets = [2, 0, 0], sizes = [1, 32, 32], strides = [1, 1, 1]} : vector<3x32x32xf32> to vector<1x32x32xf32>
    %66 = vector.shape_cast %65 : vector<1x32x32xf32> to vector<32x32xf32>
    %cst_32 = arith.constant dense<0.000000e+00> : vector<32x256xf32>
    %67 = tpu.matmul %66, %44, %cst_32 {dimension_numbers = #tpu.dot_dimension_numbers<[1], [0], [0], [1], [0, 0, 1, 1], [], []>} : vector<32x32xf32>, vector<32x256xf32>, vector<32x256xf32> -> vector<32x256xf32>
    %68 = arith.addf %64, %67 : vector<32x256xf32>
    %69 = vector.broadcast %47 : vector<32x1xf32> to vector<32x256xf32>
    %70 = arith.addf %68, %69 : vector<32x256xf32>
    %71 = arith.addf %70, %1 : vector<32x256xf32>
    %cst_33 = arith.constant 0.000000e+00 : f32
    %72 = vector.broadcast %cst_33 : f32 to vector<32x256xf32>
    %73 = arith.subf %72, %71 : vector<32x256xf32>
    %74 = math.exp %73 : vector<32x256xf32>
    %cst_34 = arith.constant 1.000000e+00 : f32
    %75 = vector.broadcast %cst_34 : f32 to vector<32x256xf32>
    %76 = arith.addf %75, %74 : vector<32x256xf32>
    %77 = arith.divf %71, %76 : vector<32x256xf32>
    %78 = vector.extract_strided_slice %3 {offsets = [3, 0, 0], sizes = [3, 32, 32], strides = [1, 1, 1]} : vector<9x32x32xf32> to vector<3x32x32xf32>
    %79 = vector.extract_strided_slice %5 {offsets = [1, 0, 0], sizes = [1, 32, 1], strides = [1, 1, 1]} : vector<3x32x1xf32> to vector<1x32x1xf32>
    %80 = vector.shape_cast %79 : vector<1x32x1xf32> to vector<32x1xf32>
    %c6_i32 = arith.constant 6 : i32
    %81 = vector.broadcast %c6_i32 : i32 to vector<32x256xi32>
    %82 = arith.cmpi sge, %2, %81 : vector<32x256xi32>
    %c6_i32_35 = arith.constant 6 : i32
    %83 = tpu.dynamic_rotate %77 by %c6_i32_35 dim 1 : vector<32x256xf32>, i32 -> vector<32x256xf32>
    %cst_36 = arith.constant 0.000000e+00 : f32
    %84 = vector.broadcast %cst_36 : f32 to vector<32x256xf32>
    %85 = arith.select %82, %83, %84 : vector<32x256xi1>, vector<32x256xf32>
    %86 = vector.extract_strided_slice %78 {offsets = [0, 0, 0], sizes = [1, 32, 32], strides = [1, 1, 1]} : vector<3x32x32xf32> to vector<1x32x32xf32>
    %87 = vector.shape_cast %86 : vector<1x32x32xf32> to vector<32x32xf32>
    %cst_37 = arith.constant dense<0.000000e+00> : vector<32x256xf32>
    %88 = tpu.matmul %87, %85, %cst_37 {dimension_numbers = #tpu.dot_dimension_numbers<[1], [0], [0], [1], [0, 0, 1, 1], [], []>} : vector<32x32xf32>, vector<32x256xf32>, vector<32x256xf32> -> vector<32x256xf32>
    %c3_i32 = arith.constant 3 : i32
    %89 = vector.broadcast %c3_i32 : i32 to vector<32x256xi32>
    %90 = arith.cmpi sge, %2, %89 : vector<32x256xi32>
    %c3_i32_38 = arith.constant 3 : i32
    %91 = tpu.dynamic_rotate %77 by %c3_i32_38 dim 1 : vector<32x256xf32>, i32 -> vector<32x256xf32>
    %cst_39 = arith.constant 0.000000e+00 : f32
    %92 = vector.broadcast %cst_39 : f32 to vector<32x256xf32>
    %93 = arith.select %90, %91, %92 : vector<32x256xi1>, vector<32x256xf32>
    %94 = vector.extract_strided_slice %78 {offsets = [1, 0, 0], sizes = [1, 32, 32], strides = [1, 1, 1]} : vector<3x32x32xf32> to vector<1x32x32xf32>
    %95 = vector.shape_cast %94 : vector<1x32x32xf32> to vector<32x32xf32>
    %cst_40 = arith.constant dense<0.000000e+00> : vector<32x256xf32>
    %96 = tpu.matmul %95, %93, %cst_40 {dimension_numbers = #tpu.dot_dimension_numbers<[1], [0], [0], [1], [0, 0, 1, 1], [], []>} : vector<32x32xf32>, vector<32x256xf32>, vector<32x256xf32> -> vector<32x256xf32>
    %97 = arith.addf %88, %96 : vector<32x256xf32>
    %98 = vector.extract_strided_slice %78 {offsets = [2, 0, 0], sizes = [1, 32, 32], strides = [1, 1, 1]} : vector<3x32x32xf32> to vector<1x32x32xf32>
    %99 = vector.shape_cast %98 : vector<1x32x32xf32> to vector<32x32xf32>
    %cst_41 = arith.constant dense<0.000000e+00> : vector<32x256xf32>
    %100 = tpu.matmul %99, %77, %cst_41 {dimension_numbers = #tpu.dot_dimension_numbers<[1], [0], [0], [1], [0, 0, 1, 1], [], []>} : vector<32x32xf32>, vector<32x256xf32>, vector<32x256xf32> -> vector<32x256xf32>
    %101 = arith.addf %97, %100 : vector<32x256xf32>
    %102 = vector.broadcast %80 : vector<32x1xf32> to vector<32x256xf32>
    %103 = arith.addf %101, %102 : vector<32x256xf32>
    %cst_42 = arith.constant 0.000000e+00 : f32
    %104 = vector.broadcast %cst_42 : f32 to vector<32x256xf32>
    %105 = arith.subf %104, %103 : vector<32x256xf32>
    %106 = math.exp %105 : vector<32x256xf32>
    %cst_43 = arith.constant 1.000000e+00 : f32
    %107 = vector.broadcast %cst_43 : f32 to vector<32x256xf32>
    %108 = arith.addf %107, %106 : vector<32x256xf32>
    %109 = arith.divf %103, %108 : vector<32x256xf32>
    %110 = vector.extract_strided_slice %4 {offsets = [3, 0, 0], sizes = [3, 32, 32], strides = [1, 1, 1]} : vector<9x32x32xf32> to vector<3x32x32xf32>
    %111 = vector.extract_strided_slice %6 {offsets = [1, 0, 0], sizes = [1, 32, 1], strides = [1, 1, 1]} : vector<3x32x1xf32> to vector<1x32x1xf32>
    %112 = vector.shape_cast %111 : vector<1x32x1xf32> to vector<32x1xf32>
    %c6_i32_44 = arith.constant 6 : i32
    %113 = vector.broadcast %c6_i32_44 : i32 to vector<32x256xi32>
    %114 = arith.cmpi sge, %2, %113 : vector<32x256xi32>
    %c6_i32_45 = arith.constant 6 : i32
    %115 = tpu.dynamic_rotate %109 by %c6_i32_45 dim 1 : vector<32x256xf32>, i32 -> vector<32x256xf32>
    %cst_46 = arith.constant 0.000000e+00 : f32
    %116 = vector.broadcast %cst_46 : f32 to vector<32x256xf32>
    %117 = arith.select %114, %115, %116 : vector<32x256xi1>, vector<32x256xf32>
    %118 = vector.extract_strided_slice %110 {offsets = [0, 0, 0], sizes = [1, 32, 32], strides = [1, 1, 1]} : vector<3x32x32xf32> to vector<1x32x32xf32>
    %119 = vector.shape_cast %118 : vector<1x32x32xf32> to vector<32x32xf32>
    %cst_47 = arith.constant dense<0.000000e+00> : vector<32x256xf32>
    %120 = tpu.matmul %119, %117, %cst_47 {dimension_numbers = #tpu.dot_dimension_numbers<[1], [0], [0], [1], [0, 0, 1, 1], [], []>} : vector<32x32xf32>, vector<32x256xf32>, vector<32x256xf32> -> vector<32x256xf32>
    %c3_i32_48 = arith.constant 3 : i32
    %121 = vector.broadcast %c3_i32_48 : i32 to vector<32x256xi32>
    %122 = arith.cmpi sge, %2, %121 : vector<32x256xi32>
    %c3_i32_49 = arith.constant 3 : i32
    %123 = tpu.dynamic_rotate %109 by %c3_i32_49 dim 1 : vector<32x256xf32>, i32 -> vector<32x256xf32>
    %cst_50 = arith.constant 0.000000e+00 : f32
    %124 = vector.broadcast %cst_50 : f32 to vector<32x256xf32>
    %125 = arith.select %122, %123, %124 : vector<32x256xi1>, vector<32x256xf32>
    %126 = vector.extract_strided_slice %110 {offsets = [1, 0, 0], sizes = [1, 32, 32], strides = [1, 1, 1]} : vector<3x32x32xf32> to vector<1x32x32xf32>
    %127 = vector.shape_cast %126 : vector<1x32x32xf32> to vector<32x32xf32>
    %cst_51 = arith.constant dense<0.000000e+00> : vector<32x256xf32>
    %128 = tpu.matmul %127, %125, %cst_51 {dimension_numbers = #tpu.dot_dimension_numbers<[1], [0], [0], [1], [0, 0, 1, 1], [], []>} : vector<32x32xf32>, vector<32x256xf32>, vector<32x256xf32> -> vector<32x256xf32>
    %129 = arith.addf %120, %128 : vector<32x256xf32>
    %130 = vector.extract_strided_slice %110 {offsets = [2, 0, 0], sizes = [1, 32, 32], strides = [1, 1, 1]} : vector<3x32x32xf32> to vector<1x32x32xf32>
    %131 = vector.shape_cast %130 : vector<1x32x32xf32> to vector<32x32xf32>
    %cst_52 = arith.constant dense<0.000000e+00> : vector<32x256xf32>
    %132 = tpu.matmul %131, %109, %cst_52 {dimension_numbers = #tpu.dot_dimension_numbers<[1], [0], [0], [1], [0, 0, 1, 1], [], []>} : vector<32x32xf32>, vector<32x256xf32>, vector<32x256xf32> -> vector<32x256xf32>
    %133 = arith.addf %129, %132 : vector<32x256xf32>
    %134 = vector.broadcast %112 : vector<32x1xf32> to vector<32x256xf32>
    %135 = arith.addf %133, %134 : vector<32x256xf32>
    %136 = arith.addf %135, %71 : vector<32x256xf32>
    %cst_53 = arith.constant 0.000000e+00 : f32
    %137 = vector.broadcast %cst_53 : f32 to vector<32x256xf32>
    %138 = arith.subf %137, %136 : vector<32x256xf32>
    %139 = math.exp %138 : vector<32x256xf32>
    %cst_54 = arith.constant 1.000000e+00 : f32
    %140 = vector.broadcast %cst_54 : f32 to vector<32x256xf32>
    %141 = arith.addf %140, %139 : vector<32x256xf32>
    %142 = arith.divf %136, %141 : vector<32x256xf32>
    %143 = vector.extract_strided_slice %3 {offsets = [6, 0, 0], sizes = [3, 32, 32], strides = [1, 1, 1]} : vector<9x32x32xf32> to vector<3x32x32xf32>
    %144 = vector.extract_strided_slice %5 {offsets = [2, 0, 0], sizes = [1, 32, 1], strides = [1, 1, 1]} : vector<3x32x1xf32> to vector<1x32x1xf32>
    %145 = vector.shape_cast %144 : vector<1x32x1xf32> to vector<32x1xf32>
    %c10_i32 = arith.constant 10 : i32
    %146 = vector.broadcast %c10_i32 : i32 to vector<32x256xi32>
    %147 = arith.cmpi sge, %2, %146 : vector<32x256xi32>
    %c10_i32_55 = arith.constant 10 : i32
    %148 = tpu.dynamic_rotate %142 by %c10_i32_55 dim 1 : vector<32x256xf32>, i32 -> vector<32x256xf32>
    %cst_56 = arith.constant 0.000000e+00 : f32
    %149 = vector.broadcast %cst_56 : f32 to vector<32x256xf32>
    %150 = arith.select %147, %148, %149 : vector<32x256xi1>, vector<32x256xf32>
    %151 = vector.extract_strided_slice %143 {offsets = [0, 0, 0], sizes = [1, 32, 32], strides = [1, 1, 1]} : vector<3x32x32xf32> to vector<1x32x32xf32>
    %152 = vector.shape_cast %151 : vector<1x32x32xf32> to vector<32x32xf32>
    %cst_57 = arith.constant dense<0.000000e+00> : vector<32x256xf32>
    %153 = tpu.matmul %152, %150, %cst_57 {dimension_numbers = #tpu.dot_dimension_numbers<[1], [0], [0], [1], [0, 0, 1, 1], [], []>} : vector<32x32xf32>, vector<32x256xf32>, vector<32x256xf32> -> vector<32x256xf32>
    %c5_i32 = arith.constant 5 : i32
    %154 = vector.broadcast %c5_i32 : i32 to vector<32x256xi32>
    %155 = arith.cmpi sge, %2, %154 : vector<32x256xi32>
    %c5_i32_58 = arith.constant 5 : i32
    %156 = tpu.dynamic_rotate %142 by %c5_i32_58 dim 1 : vector<32x256xf32>, i32 -> vector<32x256xf32>
    %cst_59 = arith.constant 0.000000e+00 : f32
    %157 = vector.broadcast %cst_59 : f32 to vector<32x256xf32>
    %158 = arith.select %155, %156, %157 : vector<32x256xi1>, vector<32x256xf32>
    %159 = vector.extract_strided_slice %143 {offsets = [1, 0, 0], sizes = [1, 32, 32], strides = [1, 1, 1]} : vector<3x32x32xf32> to vector<1x32x32xf32>
    %160 = vector.shape_cast %159 : vector<1x32x32xf32> to vector<32x32xf32>
    %cst_60 = arith.constant dense<0.000000e+00> : vector<32x256xf32>
    %161 = tpu.matmul %160, %158, %cst_60 {dimension_numbers = #tpu.dot_dimension_numbers<[1], [0], [0], [1], [0, 0, 1, 1], [], []>} : vector<32x32xf32>, vector<32x256xf32>, vector<32x256xf32> -> vector<32x256xf32>
    %162 = arith.addf %153, %161 : vector<32x256xf32>
    %163 = vector.extract_strided_slice %143 {offsets = [2, 0, 0], sizes = [1, 32, 32], strides = [1, 1, 1]} : vector<3x32x32xf32> to vector<1x32x32xf32>
    %164 = vector.shape_cast %163 : vector<1x32x32xf32> to vector<32x32xf32>
    %cst_61 = arith.constant dense<0.000000e+00> : vector<32x256xf32>
    %165 = tpu.matmul %164, %142, %cst_61 {dimension_numbers = #tpu.dot_dimension_numbers<[1], [0], [0], [1], [0, 0, 1, 1], [], []>} : vector<32x32xf32>, vector<32x256xf32>, vector<32x256xf32> -> vector<32x256xf32>
    %166 = arith.addf %162, %165 : vector<32x256xf32>
    %167 = vector.broadcast %145 : vector<32x1xf32> to vector<32x256xf32>
    %168 = arith.addf %166, %167 : vector<32x256xf32>
    %cst_62 = arith.constant 0.000000e+00 : f32
    %169 = vector.broadcast %cst_62 : f32 to vector<32x256xf32>
    %170 = arith.subf %169, %168 : vector<32x256xf32>
    %171 = math.exp %170 : vector<32x256xf32>
    %cst_63 = arith.constant 1.000000e+00 : f32
    %172 = vector.broadcast %cst_63 : f32 to vector<32x256xf32>
    %173 = arith.addf %172, %171 : vector<32x256xf32>
    %174 = arith.divf %168, %173 : vector<32x256xf32>
    %175 = vector.extract_strided_slice %4 {offsets = [6, 0, 0], sizes = [3, 32, 32], strides = [1, 1, 1]} : vector<9x32x32xf32> to vector<3x32x32xf32>
    %176 = vector.extract_strided_slice %6 {offsets = [2, 0, 0], sizes = [1, 32, 1], strides = [1, 1, 1]} : vector<3x32x1xf32> to vector<1x32x1xf32>
    %177 = vector.shape_cast %176 : vector<1x32x1xf32> to vector<32x1xf32>
    %c10_i32_64 = arith.constant 10 : i32
    %178 = vector.broadcast %c10_i32_64 : i32 to vector<32x256xi32>
    %179 = arith.cmpi sge, %2, %178 : vector<32x256xi32>
    %c10_i32_65 = arith.constant 10 : i32
    %180 = tpu.dynamic_rotate %174 by %c10_i32_65 dim 1 : vector<32x256xf32>, i32 -> vector<32x256xf32>
    %cst_66 = arith.constant 0.000000e+00 : f32
    %181 = vector.broadcast %cst_66 : f32 to vector<32x256xf32>
    %182 = arith.select %179, %180, %181 : vector<32x256xi1>, vector<32x256xf32>
    %183 = vector.extract_strided_slice %175 {offsets = [0, 0, 0], sizes = [1, 32, 32], strides = [1, 1, 1]} : vector<3x32x32xf32> to vector<1x32x32xf32>
    %184 = vector.shape_cast %183 : vector<1x32x32xf32> to vector<32x32xf32>
    %cst_67 = arith.constant dense<0.000000e+00> : vector<32x256xf32>
    %185 = tpu.matmul %184, %182, %cst_67 {dimension_numbers = #tpu.dot_dimension_numbers<[1], [0], [0], [1], [0, 0, 1, 1], [], []>} : vector<32x32xf32>, vector<32x256xf32>, vector<32x256xf32> -> vector<32x256xf32>
    %c5_i32_68 = arith.constant 5 : i32
    %186 = vector.broadcast %c5_i32_68 : i32 to vector<32x256xi32>
    %187 = arith.cmpi sge, %2, %186 : vector<32x256xi32>
    %c5_i32_69 = arith.constant 5 : i32
    %188 = tpu.dynamic_rotate %174 by %c5_i32_69 dim 1 : vector<32x256xf32>, i32 -> vector<32x256xf32>
    %cst_70 = arith.constant 0.000000e+00 : f32
    %189 = vector.broadcast %cst_70 : f32 to vector<32x256xf32>
    %190 = arith.select %187, %188, %189 : vector<32x256xi1>, vector<32x256xf32>
    %191 = vector.extract_strided_slice %175 {offsets = [1, 0, 0], sizes = [1, 32, 32], strides = [1, 1, 1]} : vector<3x32x32xf32> to vector<1x32x32xf32>
    %192 = vector.shape_cast %191 : vector<1x32x32xf32> to vector<32x32xf32>
    %cst_71 = arith.constant dense<0.000000e+00> : vector<32x256xf32>
    %193 = tpu.matmul %192, %190, %cst_71 {dimension_numbers = #tpu.dot_dimension_numbers<[1], [0], [0], [1], [0, 0, 1, 1], [], []>} : vector<32x32xf32>, vector<32x256xf32>, vector<32x256xf32> -> vector<32x256xf32>
    %194 = arith.addf %185, %193 : vector<32x256xf32>
    %195 = vector.extract_strided_slice %175 {offsets = [2, 0, 0], sizes = [1, 32, 32], strides = [1, 1, 1]} : vector<3x32x32xf32> to vector<1x32x32xf32>
    %196 = vector.shape_cast %195 : vector<1x32x32xf32> to vector<32x32xf32>
    %cst_72 = arith.constant dense<0.000000e+00> : vector<32x256xf32>
    %197 = tpu.matmul %196, %174, %cst_72 {dimension_numbers = #tpu.dot_dimension_numbers<[1], [0], [0], [1], [0, 0, 1, 1], [], []>} : vector<32x32xf32>, vector<32x256xf32>, vector<32x256xf32> -> vector<32x256xf32>
    %198 = arith.addf %194, %197 : vector<32x256xf32>
    %199 = vector.broadcast %177 : vector<32x1xf32> to vector<32x256xf32>
    %200 = arith.addf %198, %199 : vector<32x256xf32>
    %201 = arith.addf %200, %136 : vector<32x256xf32>
    %c0_73 = arith.constant 0 : index
    %c0_74 = arith.constant 0 : index
    %c0_75 = arith.constant 0 : index
    %202 = vector.load %arg6[%c0_73, %c0_74, %c0_75] : memref<1x32x256xf32, #tpu.memory_space<vmem>>, vector<1x32x256xf32>
    %203 = vector.shape_cast %202 : vector<1x32x256xf32> to vector<32x256xf32>
    %204 = vector.shape_cast %201 : vector<32x256xf32> to vector<1x32x256xf32>
    tpu.vector_store %arg6[%c0_73, %c0_74, %c0_75], %204 {strides = array<i32>} : memref<1x32x256xf32, #tpu.memory_space<vmem>>, vector<1x32x256xf32>,
    return
  }
  func.func @transform_0(%arg0: i32) -> (i32, i32, i32) {
    %c0_i32 = arith.constant 0 : i32
    %c0_i32_0 = arith.constant 0 : i32
    %c0_i32_1 = arith.constant 0 : i32
    return %arg0, %c0_i32, %c0_i32_0 : i32, i32, i32
  }
  func.func @transform_1(%arg0: i32) -> (i32, i32, i32) {
    %c0_i32 = arith.constant 0 : i32
    %c0_i32_0 = arith.constant 0 : i32
    %c0_i32_1 = arith.constant 0 : i32
    %c0_i32_2 = arith.constant 0 : i32
    return %c0_i32, %c0_i32_0, %c0_i32_1 : i32, i32, i32
  }
  func.func @transform_2(%arg0: i32) -> (i32, i32, i32) {
    %c0_i32 = arith.constant 0 : i32
    %c0_i32_0 = arith.constant 0 : i32
    %c0_i32_1 = arith.constant 0 : i32
    %c0_i32_2 = arith.constant 0 : i32
    return %c0_i32, %c0_i32_0, %c0_i32_1 : i32, i32, i32
  }
  func.func @transform_3(%arg0: i32) -> (i32, i32, i32) {
    %c0_i32 = arith.constant 0 : i32
    %c0_i32_0 = arith.constant 0 : i32
    %c0_i32_1 = arith.constant 0 : i32
    %c0_i32_2 = arith.constant 0 : i32
    return %c0_i32, %c0_i32_0, %c0_i32_1 : i32, i32, i32
  }
  func.func @transform_4(%arg0: i32) -> (i32, i32, i32) {
    %c0_i32 = arith.constant 0 : i32
    %c0_i32_0 = arith.constant 0 : i32
    %c0_i32_1 = arith.constant 0 : i32
    %c0_i32_2 = arith.constant 0 : i32
    return %c0_i32, %c0_i32_0, %c0_i32_1 : i32, i32, i32
  }
  func.func @transform_5(%arg0: i32) -> (i32, i32, i32) {
    %c0_i32 = arith.constant 0 : i32
    %c0_i32_0 = arith.constant 0 : i32
    %c0_i32_1 = arith.constant 0 : i32
    return %arg0, %c0_i32, %c0_i32_0 : i32, i32, i32
  }
}

</mosaic_0001>

<bundles_post_ra>
// kernel: resblock1_forward.1
= control target key start
LH: loop header
LB: loop body
LE: loop exit
PB: predicated region body
PF: predicated region fallthrough
CT: control target
= control target key end

     0   :  { %10 = vsyncpa [#allocation3], 0  ;;  %s5460_s0 = inlined_call_operand.vmem [shape: f32[2,32,256], index: 0, kind: input, shape index: {}]   ;;  %s5461_s1 = inlined_call_operand.hbm [shape: f32[9,32,32], index: 1, kind: input, shape index: {}]   ;;  %s5462_s2 = inlined_call_operand.vmem [shape: f32[3,32,1], index: 2, kind: input, shape index: {}]   ;;  %s5463_s3 = inlined_call_operand.hbm [shape: f32[9,32,32], index: 3, kind: input, shape index: {}]   ;;  %s5464_s4 = inlined_call_operand.vmem [shape: f32[3,32,1], index: 4, kind: input, shape index: {}]   ;;  %s5465_s5 = inlined_call_operand.hbm [shape: f32[2,32,256], index: 5, kind: output, shape index: {}]  }
   0x1   :  { %11 = vsyncpa [#allocation6], 0 }
   0x2   :  { %12 = vsyncpa [#allocation4], 0 }
   0x3   :  { %14 = vsyncpa [#allocation4 + $0x1], 0  ;;  %s4296_s18 = smov 0   ;;  %s4298_s19 = smov 0  }
   0x4   :  { %s4300_s20 = smov 0   ;;  %s4302_s21 = smov 0  }
   0x5 LB: > { %s4317_s22 = sadd.s32 4294967295, %s4249_s21   ;;  %s3215_s23 = sadd.s32 4294967294, %s4249_s21   ;;  %s4249_s21 = sphi %s4302_s21, %s5495_s21   ;;  %s4245_s20 = sphi %s4300_s20, %s5494_s20   ;;  %s4241_s19 = sphi %s4298_s19, %s5493_s19   ;;  %s4237_s18 = sphi %s4296_s18, %s5492_s18  }
   0x6   : > { %s4321_s24 = sadd.s32 1, %s4249_s21   ;;  %s137_s25 = sadd.s32 1, %s4245_s20 }
   0x7   : > { %s134_s26 = ssub.s32 %s4249_s21, %s4321_s24  ;;  %p147_p0 = scmp.ne.s32.totalorder %s4245_s20, %s4241_s19 }
   0x8   : > { %p135_p1 = scmp.eq.s32.totalorder %s134_s26, 0  ;;  %p148_p2 = scmp.eq.s32.totalorder %s4317_s22, 1 }
   0x9   : > { %p153_p3 = scmp.ne.s32.totalorder %s4241_s19, %s4237_s18  ;;  %p154_p4 = scmp.eq.s32.totalorder %s3215_s23, 1 }
   0xa   : > { %s4332_s27 = scalar_select %p135_p1, %s4245_s20, %s137_s25  }
   0xb   : > { %p4334_p5 = por %p148_p2, %p147_p0  ;;  %p4338_p6 = por %p154_p4, %p153_p3 }
   0xc   : > { %p3216_p7 = scmp.ge.s32.totalorder %s4249_s21, 1  ;;  %p161_p8 = scmp.lt.s32.totalorder %s4249_s21, 3 }
   0xd   : > { %s5469_s28 = scalar_select %p4334_p5, 1, 0 }
   0xe   : > { %s5470_s29 = scalar_select %p4338_p6, 1, 0 }
   0xf   : > { %p5466_p9 = scmp.eq.s32.totalorder %s4317_s22, 0  ;;  %p4345_p10 = pnand %p3216_p7, %p161_p8 }
  0x10   : > { %s4251_s6 = smov [#allocation2]   ;;  %s4252_s9 = smov [#allocation5]  }
  0x11   : > { %s5471_s30 = scalar_select %p4345_p10, 1, 0 }
  0x12   : > { %s173_s7 = sshll.u32 %s4251_s6, 4  ;;  %p3627_p11 = pneg %p4345_p10  ;;  %s174_s7 = int_to_ptr.vmem [resolvable:$true] %s173_s7 }
  0x13   : > { %s189_s10 = sshll.u32 %s4252_s9, 4  ;;  %s4123_s13 = scalar_lea.hbm %s5461_s1, 4608  ;;  %s4357_s10 = int_to_ptr.vmem [resolvable:$true] %s189_s10 }
  0x14   : > { %p4353_p12 = pnand %p5466_p9, %p3627_p11  ;;  %p4124_p13 = scmp.ne.s32.totalorder %s5461_s1, %s4123_s13 }
  0x15   : > { %p4130_p3 = scmp.lt.u32.totalorder %s4123_s13, %s5461_s1 }
  0x16   : > { %p4125_p0 = pneg %p4353_p12 }
  0x18   : > { %p4126_p1 = pnand %p4125_p0, %p4124_p13 }
  0x1a   : > { %p4127_p2 = pneg %p4126_p1 }
  0x1c   : > { %p4132_p4 = pnand %p4130_p3, %p4127_p2 }
  0x1e   : > { %4135 = shalt.err (!%p4132_p4)
}
  0x1f   : > { %s4136_s23 = scalar_lea.vmem %s174_s7, 4608  ;;  %p4144_p9 = scmp.lt.s32.totalorder %s174_s7, %s174_s7 }
  0x20   : > { %p4137_p7 = scmp.ne.s32.totalorder %s174_s7, %s4136_s23  ;;  %p4145_p6 = scmp.lt.s32.totalorder %s4136_s23, %s4136_s23 }
  0x22   : > { %p4139_p8 = pnand %p4137_p7, %p4125_p0  ;;  %p4146_p5 = por %p4145_p6, %p4144_p9 }
  0x24   : > { %p4140_p11 = pneg %p4139_p8 }
  0x26   : > { %p4147_p10 = pnand %p4146_p5, %p4140_p11 }
  0x28   : > { %4150 = shalt.err (!%p4147_p10)
}
  0x29   : > { %s4253_s25 = smov 128   ;;  %s4254_s26 = smov 8  }
  0x2a   : > { %3630 = dma.hbm_to_vmem [thread:$0]  (!%p4353_p12), %s5461_s1, 4608, %s174_s7, [#allocation3], %s4253_s25, %s4253_s25, %s4254_s26  }
  0x2b   : > { %s4151_s13 = scalar_lea.hbm %s5463_s3, 4608 }
  0x2c   : > { %p4152_p13 = scmp.ne.s32.totalorder %s5463_s3, %s4151_s13  ;;  %p4158_p9 = scmp.lt.u32.totalorder %s4151_s13, %s5463_s3 }
  0x2e   : > { %p4154_p5 = pnand %p4152_p13, %p4125_p0 }
  0x30   : > { %p4155_p6 = pneg %p4154_p5 }
  0x32   : > { %p4160_p10 = pnand %p4158_p9, %p4155_p6 }
  0x34   : > { %4163 = shalt.err (!%p4160_p10)
}
  0x35   : > { %s4164_s7 = scalar_lea.vmem %s4357_s10, 4608  ;;  %p4172_p4 = scmp.lt.s32.totalorder %s4357_s10, %s4357_s10 }
  0x36   : > { %p4165_p1 = scmp.ne.s32.totalorder %s4357_s10, %s4164_s7  ;;  %p4173_p7 = scmp.lt.s32.totalorder %s4164_s7, %s4164_s7 }
  0x38   : > { %p4167_p2 = pnand %p4165_p1, %p4125_p0  ;;  %p4174_p8 = por %p4173_p7, %p4172_p4 }
  0x3a   : > { %p4168_p3 = pneg %p4167_p2 }
  0x3c   : > { %p4175_p11 = pnand %p4174_p8, %p4168_p3 }
  0x3e   : > { %4178 = shalt.err (!%p4175_p11)
}
  0x3f   : > { %3633 = dma.hbm_to_vmem [thread:$0]  (!%p4353_p12), %s5463_s3, 4608, %s4357_s10, [#allocation6], %s4253_s25, %s4253_s25, %s4254_s26  }
  0x40   : > { %p5473_p13 = scmp.ne.s32.totalorder %s5471_s30, 0 }
  0x41   : > { %p5474_p5 = scmp.eq.s32.totalorder (!%p5473_p13), %s4317_s22, 0 }
  0x42   : > { %216 = sbr.rel (%p5473_p13) target bundleno = 2617 (0xa39), region = 40 }
  0x49   : > { %4224 = dma.done.wait (%p5474_p5), [#allocation3], 4608   ;;  %p5475_p0 = pmov %p5474_p5 }
  0x4b   : > { %4226 = vsyncadd (%p5475_p0), [#allocation3], 4294962688  ;;  %p5476_p6 = pmov %p5475_p0 }
  0x4c   : > { %p5477_p9 = pmov %p5475_p0 }
  0x4d   : > { %4228 = dma.done.wait (%p5476_p6), [#allocation6], 4608  }
  0x4e   : > { %4230 = vsyncadd (%p5477_p9), [#allocation6], 4294962688  ;;  %p248_p10 = scmp.lt.s32.totalorder %s4317_s22, 1  ;;  %s4255_s9 = smov 1   ;;  %v4256_v60 = vmov 0.0   ;;  %vm478_vm5 = vcmask 261120  }
  0x4f   : > { %555 = vmatprep.mubr.f32.mxu0 %v4256_v60  ;;  %1006 = vmatprep.mubr.f32.mxu1 %v4256_v60  ;;  %s4257_s11 = smov 2   ;;  %s4260_s13 = smov 6  }
  0x50   : > { %s249_s8 = scalar_select %p248_p10, %s4317_s22, 1 }
  0x51   : > { %s4262_s15 = smov 10   ;;  %s3352_s6 = sshll.u32 %s4317_s22, 10 }
  0x52   : > { %s3351_s10 = sshll.u32 %s249_s8, 6  ;;  %s5413_s25 = scalar_lea.hbm %s5465_s5, %s3352_s6 }
  0x53   : > { %s252_s26 = scalar_lea.vmem %s5460_s0, %s3351_s10  ;;  %p5490_p1 = scmp.ne.s32.totalorder %s5469_s28, 0 }
  0x54   : > { %v4421_v0 = vld [vmem:[%s252_s26 + $0x20] sm:$0xff]  ;;  %v4423_v1 = vld [vmem:[%s252_s26 + $0x30] sm:$0xff]  ;;  %v4432_v7 = vld [vmem:[%s252_s26 + $0x28] sm:$0xff] }
  0x55   : > { %v4425_v2 = vld [vmem:[%s252_s26] sm:$0xff]  ;;  %v364_v3 = vsub.f32 0.0, %v4421_v0  ;;  %v366_v4 = vsub.f32 0.0, %v4423_v1  ;;  %v4429_v5 = vld [vmem:[%s252_s26 + $0x10] sm:$0xff]  ;;  %v4434_v8 = vld [vmem:[%s252_s26 + $0x38] sm:$0xff]  ;;  %v365_v10 = vsub.f32 0.0, %v4432_v7 }
  0x56   : > { %v360_v6 = vsub.f32 0.0, %v4425_v2  ;;  %v362_v9 = vsub.f32 0.0, %v4429_v5  ;;  %v367_v11 = vsub.f32 0.0, %v4434_v8  ;;  %v4439_v12 = vld [vmem:[%s252_s26 + $0x8] sm:$0xff]  ;;  %v4441_v13 = vld [vmem:[%s252_s26 + $0x18] sm:$0xff]  ;;  %s4263_s26 = smov [#allocation7]  }
  0x57   : > { %v376_v14 = vmul.f32 1.442695, %v364_v3  ;;  %v380_v15 = vmul.f32 1.442695, %v366_v4  ;;  %v378_v18 = vmul.f32 1.442695, %v365_v10 }
  0x58   : > { %v368_v16 = vmul.f32 1.442695, %v360_v6  ;;  %v372_v17 = vmul.f32 1.442695, %v362_v9  ;;  %v361_v19 = vsub.f32 0.0, %v4439_v12  ;;  %v363_v20 = vsub.f32 0.0, %v4441_v13 }
  0x59   : > { %3931 = vpow2.f32 %v376_v14  ;;  %v382_v21 = vmul.f32 1.442695, %v367_v11  ;;  %v336_v4 = vld [vmem:[%s5462_s2] sm:$0xff]  ;;  %v337_v6 = vld [vmem:[%s5462_s2 + $0x8] sm:$0xff]  ;;  %v4258_v9 = vmov 0   ;;  %v338_v10 = vld [vmem:[%s5462_s2 + $0x10] sm:$0xff]  ;;  %v261_v14 = vlaneseq }
  0x5a   : > { %3933 = vpow2.f32 %v380_v15  ;;  %v370_v22 = vmul.f32 1.442695, %v361_v19  ;;  %v374_v23 = vmul.f32 1.442695, %v363_v20  ;;  %3729 = vset.pattern.permute.xlu0 %v4258_v9  ;;  %3730 = vset.pattern.permute.xlu1 %v4258_v9  ;;  %v339_v11 = vld [vmem:[%s5462_s2 + $0x18] sm:$0xff] }
  0x5b   : > { %3935 = vpow2.f32 %v368_v16  ;;  %v4507_v16 = vand.u32 127, %v261_v14 }
  0x5c   : > { %3937 = vpow2.f32 %v372_v17 }
  0x5d   : > { %3939 = vpow2.f32 %v378_v18  ;;  %vm461_vm0 = vcmp.lt.s32.totalorder %v4507_v16, 1  ;;  %vm443_vm1 = vcmp.ge.s32.totalorder %v4507_v16, 1  ;;  %vm426_vm3 = vcmp.lt.s32.totalorder %v4507_v16, 2 }
  0x5e   : > { %3941 = vpow2.f32 %v382_v21  ;;  %vm4523_vm2 = vmpackc.low %vm443_vm1, %vm443_vm1  ;;  %vm408_vm4 = vcmp.ge.s32.totalorder %v4507_v16, 2  ;;  %vm1378_vm7 = vcmp.lt.s32.totalorder %v4507_v16, 3  ;;  %vm1360_vm8 = vcmp.ge.s32.totalorder %v4507_v16, 3 }
  0x5f   : > { %3943 = vpow2.f32 %v370_v22  ;;  %vm4549_vm6 = vmpackc.low %vm408_vm4, %vm408_vm4  ;;  %vm1343_vm10 = vcmp.lt.s32.totalorder %v4507_v16, 6  ;;  %vm1325_vm11 = vcmp.ge.s32.totalorder %v4507_v16, 6  ;;  %vm2294_vm13 = vcmp.lt.s32.totalorder %v4507_v16, 5 }
  0x60   : > { %3945 = vpow2.f32 %v374_v23  ;;  %vm4843_vm9 = vmpackc.low %vm1360_vm8, %vm1360_vm8  ;;  %vm2276_vm14 = vcmp.ge.s32.totalorder %v4507_v16, 5  ;;  %vm2241_vm1 = vcmp.ge.s32.totalorder %v4507_v16, 10 }
  0x61   : > { %vm4869_vm12 = vmpackc.low %vm1325_vm11, %vm1325_vm11 }
  0x62   : > { %vm5167_vm15 = vmpackc.low %vm2276_vm14, %vm2276_vm14 }
  0x63   : > { %v3932_v24 = vpop.eup %3931 }
  0x64   : > { %v3934_v25 = vpop.eup %3933  ;;  %v388_v26 = vadd.f32 1.0, %v3932_v24 }
  0x65   : > { %v3936_v27 = vpop.eup %3935  ;;  %v390_v28 = vadd.f32 1.0, %v3934_v25 }
  0x66   : > { %v3938_v29 = vpop.eup %3937  ;;  %3947 = vrcp.f32 %v388_v26  ;;  %v384_v30 = vadd.f32 1.0, %v3936_v27 }
  0x67   : > { %v3940_v31 = vpop.eup %3939  ;;  %3949 = vrcp.f32 %v390_v28  ;;  %v386_v32 = vadd.f32 1.0, %v3938_v29 }
  0x68   : > { %v3942_v33 = vpop.eup %3941  ;;  %3951 = vrcp.f32 %v384_v30  ;;  %v389_v34 = vadd.f32 1.0, %v3940_v31 }
  0x69   : > { %v3944_v35 = vpop.eup %3943  ;;  %3953 = vrcp.f32 %v386_v32  ;;  %v391_v36 = vadd.f32 1.0, %v3942_v33 }
  0x6a   : > { %v3946_v37 = vpop.eup %3945  ;;  %3955 = vrcp.f32 %v389_v34  ;;  %v385_v38 = vadd.f32 1.0, %v3944_v35 }
  0x6b   : > { %3957 = vrcp.f32 %v391_v36  ;;  %v387_v39 = vadd.f32 1.0, %v3946_v37 }
  0x6c   : > { %3959 = vrcp.f32 %v385_v38 }
  0x6d   : > { %3961 = vrcp.f32 %v387_v39 }
  0x70   : > { %v3948_v40 = vpop.eup %3947 }
  0x71   : > { %v3950_v41 = vpop.eup %3949  ;;  %v4446_v42 = vmul.f32 %v3948_v40, %v4421_v0 }
  0x72   : > { %v3952_v43 = vpop.eup %3951  ;;  %v4449_v44 = vmul.f32 %v3950_v41, %v4423_v1 }
  0x73   : > { %v3954_v45 = vpop.eup %3953  ;;  %v4452_v46 = vmul.f32 %v3952_v43, %v4425_v2 }
  0x74   : > { %v3956_v47 = vpop.eup %3955  ;;  %v3699_v48 = vpack.i.bf16 %v4449_v44, %v4446_v42  ;;  %v4457_v49 = vmul.f32 %v3954_v45, %v4429_v5  ;;  %v3379_v3 = vpack.c.bf16 %v4449_v44, %v4446_v42  ;;  %v274_v42 = vld [vmem:[#allocation2 + $0x50] sm:$0xff]  ;;  %v275_v44 = vld [vmem:[#allocation2 + $0x58] sm:$0xff] }
  0x75   : > { %v3958_v50 = vpop.eup %3957  ;;  %v4460_v51 = vmul.f32 %v3956_v47, %v4432_v7 }
  0x76   : > { %v3960_v52 = vpop.eup %3959  ;;  %3700 = vrot.lane.b32.xlu1 %v3699_v48, %s4255_s9  ;;  %v3689_v53 = vpack.i.bf16 %v4457_v49, %v4452_v46  ;;  %v4466_v54 = vmul.f32 %v3958_v50, %v4434_v8  ;;  %v3375_v62 = vpack.c.bf16 %v4457_v49, %v4452_v46  ;;  %v272_v46 = vld [vmem:[#allocation2 + $0x40] sm:$0xff]  ;;  %v273_v49 = vld [vmem:[#allocation2 + $0x48] sm:$0xff] }
  0x77   : > { %v3962_v55 = vpop.eup %3961  ;;  %v4469_v56 = vmul.f32 %v3960_v52, %v4439_v12 }
  0x78   : > { %3690 = vrot.lane.b32.xlu0 %v3689_v53, %s4255_s9  ;;  %v3704_v57 = vpack.i.bf16 %v4466_v54, %v4460_v51  ;;  %v4475_v58 = vmul.f32 %v3962_v55, %v4441_v13  ;;  %v3377_v63 = vpack.c.bf16 %v4466_v54, %v4460_v51 }
  0x7a   : > { %3705 = vrot.lane.b32.xlu1 %v3704_v57, %s4255_s9  ;;  %v3694_v59 = vpack.i.bf16 %v4475_v58, %v4469_v56  ;;  %v3373_v61 = vpack.c.bf16 %v4475_v58, %v4469_v56  ;;  %v266_v56 = vld [vmem:[#allocation2 + $0x10] sm:$0xff]  ;;  %v267_v58 = vld [vmem:[#allocation2 + $0x18] sm:$0xff] }
  0x7c   : > { %3695 = vrot.lane.b32.xlu0 %v3694_v59, %s4255_s9 }
  0x7e   : > { %3715 = vrot.lane.b32.xlu1 %v3694_v59, %s4257_s11 }
  0x80   : > { %3710 = vrot.lane.b32.xlu0 %v3689_v53, %s4257_s11 }
  0x82   : > { %3725 = vrot.lane.b32.xlu1 %v3704_v57, %s4257_s11 }
  0x84   : > { %3720 = vrot.lane.b32.xlu0 %v3699_v48, %s4257_s11 }
  0x86   : > { %797 = vperm.xlu1 %3730, %v337_v6  }
  0x88   : > { %792 = vperm.xlu0 %3729, %v336_v4  }
  0x8a   : > { %802 = vperm.xlu1 %3730, %v338_v10  }
  0x8c   : > { %807 = vperm.xlu0 %3729, %v339_v11  }
  0xe8   : > { %v3701_v15 = vpop.permute.xlu1 %3700 }
  0xe9   : > { %v3703_v18 = vunpack.i.h.bf16 %v3701_v15  ;;  %v3702_v19 = vunpack.i.l.bf16 %v3701_v15 }
  0xea   : > { %v3691_v17 = vpop.permute.xlu0 %3690 }
  0xeb   : > { %v3693_v24 = vunpack.i.h.bf16 %v3691_v17  ;;  %v3692_v25 = vunpack.i.l.bf16 %v3691_v17  ;;  %v268_v17 = vld [vmem:[#allocation2 + $0x20] sm:$0xff] }
  0xec   : > { %v3706_v20 = vpop.permute.xlu1 %3705 }
  0xed   : > { %v3708_v21 = vunpack.i.h.bf16 %v3706_v20  ;;  %v3707_v22 = vunpack.i.l.bf16 %v3706_v20  ;;  %v301_v20 = vld [vmem:[#allocation5 + $0x8] sm:$0xff] }
  0xee   : > { %v3696_v23 = vpop.permute.xlu0 %3695 }
  0xef   : > { %v3698_v26 = vunpack.i.h.bf16 %v3696_v23  ;;  %v3697_v27 = vunpack.i.l.bf16 %v3696_v23  ;;  %v464_v28 = vsel %vm461_vm0, %v3702_v19, %v3707_v22  ;;  %v465_v29 = vsel %vm461_vm0, %v3703_v18, %v3708_v21 }
  0xf0   : > { %v3716_v30 = vpop.permute.xlu1 %3715  ;;  %v468_v45 = vsel %vm461_vm0, %v3707_v22, %v3702_v19  ;;  %v469_v47 = vsel %vm461_vm0, %v3708_v21, %v3703_v18  ;;  %v3358_v48 = vpack.c.bf16 %v465_v29, %v464_v28  ;;  %v264_v28 = vld [vmem:[#allocation2] sm:$0xff]  ;;  %v265_v29 = vld [vmem:[#allocation2 + $0x8] sm:$0xff] }
  0xf1   : > { %v462_v31 = vsel %vm461_vm0, %v3692_v25, %v3697_v27  ;;  %v463_v32 = vsel %vm461_vm0, %v3693_v24, %v3698_v26  ;;  %v466_v33 = vsel %vm461_vm0, %v3697_v27, %v3692_v25  ;;  %v467_v34 = vsel %vm461_vm0, %v3698_v26, %v3693_v24  ;;  %v269_v24 = vld [vmem:[#allocation2 + $0x28] sm:$0xff]  ;;  %v270_v26 = vld [vmem:[#allocation2 + $0x30] sm:$0xff]  ;;  %v271_v27 = vld [vmem:[#allocation2 + $0x38] sm:$0xff] }
  0xf2   : > { %v3353_v35 = vpack.c.bf16 %v463_v32, %v462_v31  ;;  %v3355_v36 = vpack.c.bf16 %v467_v34, %v466_v33  ;;  %v3718_v38 = vunpack.i.h.bf16 %v3716_v30  ;;  %v3711_v39 = vpop.permute.xlu0 %3710  ;;  %v3717_v40 = vunpack.i.l.bf16 %v3716_v30 }
  0xf3   : > { %v3713_v41 = vunpack.i.h.bf16 %v3711_v39  ;;  %v3712_v43 = vunpack.i.l.bf16 %v3711_v39  ;;  %v3360_v10 = vpack.c.bf16 %v469_v47, %v468_v45 }
  0xf4   : > { %3354 = vmatprep.subr.bf16.mxu0 %v3353_v35  ;;  %v3726_v50 = vpop.permute.xlu1 %3725 }
  0xf5   : > { %3357 = vmatpush1.bf16.msk.msra.mxu0 %vm4523_vm2, %v3355_v36  ;;  %v432_v52 = vsel %vm426_vm3, %v3718_v38, %v3713_v41  ;;  %v427_v53 = vsel %vm426_vm3, %v3712_v43, %v3717_v40  ;;  %v428_v55 = vsel %vm426_vm3, %v3713_v41, %v3718_v38  ;;  %v431_v57 = vsel %vm426_vm3, %v3717_v40, %v3712_v43 }
  0xf6   : > { %3359 = vmatprep.subr.bf16.mxu0 %v3358_v48  ;;  %v3363_v59 = vpack.c.bf16 %v428_v55, %v427_v53  ;;  %v3728_v4 = vunpack.i.h.bf16 %v3726_v50  ;;  %v3727_v6 = vunpack.i.l.bf16 %v3726_v50  ;;  %v3721_v9 = vpop.permute.xlu0 %3720  ;;  %v3365_v15 = vpack.c.bf16 %v432_v52, %v431_v57 }
  0xf7   : > { %v3723_v11 = vunpack.i.h.bf16 %v3721_v9  ;;  %v3722_v14 = vunpack.i.l.bf16 %v3721_v9 }
  0xf9   : > { %3362 = vmatpush1.bf16.msk.msra.mxu0 %vm4523_vm2, %v3360_v10  ;;  %v429_v18 = vsel %vm426_vm3, %v3722_v14, %v3727_v6  ;;  %v430_v19 = vsel %vm426_vm3, %v3723_v11, %v3728_v4  ;;  %v434_v21 = vsel %vm426_vm3, %v3728_v4, %v3723_v11  ;;  %v433_v22 = vsel %vm426_vm3, %v3727_v6, %v3722_v14 }
  0xfa   : > { %3364 = vmatprep.subr.bf16.mxu0 %v3363_v59  ;;  %v3368_v23 = vpack.c.bf16 %v430_v19, %v429_v18  ;;  %v3370_v25 = vpack.c.bf16 %v434_v21, %v433_v22 }
  0xfc   : > { %3230 = vmatmul.mubr.msk.f32.vlgmr.msra.gmra.mrb[0].mxu0 %vm478_vm5, %v268_v17 }
  0xfd   : > { %561 = vmatprep.mubr.f32.mxu0 %v4256_v60  ;;  %3367 = vmatpush1.bf16.msk.msra.mxu0 %vm4549_vm6, %v3365_v15 }
  0xfe   : > { %3369 = vmatprep.subr.bf16.mxu0 %v3368_v23 }
 0x100   : > { %3231 = vmatmul.mubr.msk.f32.gmra.mrb[2].mxu0 %vm478_vm5, %v269_v24 }
 0x101   : > { %567 = vmatprep.mubr.f32.mxu0 %v4256_v60  ;;  %3372 = vmatpush1.bf16.msk.msra.mxu0 %vm4549_vm6, %v3370_v25 }
 0x102   : > { %3374 = vmatprep.subr.bf16.mxu0 %v3373_v61 }
 0x104   : > { %3232 = vmatmul.mubr.msk.f32.gmra.mrb[4].mxu0 %vm478_vm5, %v270_v26 }
 0x105   : > { %573 = vmatprep.mubr.f32.mxu0 %v4256_v60  ;;  %v798_v61 = vpop.permute.xlu1 %797 }
 0x107   : > { %v793_v51 = vpop.permute.xlu0 %792 }
 0x108   : > { %3233 = vmatmul.mubr.msk.f32.gmra.mrb[6].mxu0 %vm478_vm5, %v271_v27 }
 0x109   : > { %656 = vmatprep.mubr.f32.mxu0 %v4256_v60  ;;  %v803_v39 = vpop.permute.xlu1 %802 }
 0x10b   : > { %v808_v55 = vpop.permute.xlu0 %807 }
 0x10c   : > { %3238 = vmatmul.mubr.msk.f32.vlgmr.msra.gmra.mrb[0].mxu0 %vm478_vm5, %v264_v28 }
 0x10d   : > { %662 = vmatprep.mubr.f32.mxu0 %v4256_v60  ;;  %3376 = vmatpush1.bf16.msra.mxu0 %v3375_v62 }
 0x10e   : > { %3378 = vmatprep.subr.bf16.mxu0 %v3377_v63 }
 0x110   : > { %3239 = vmatmul.mubr.msk.f32.gmra.mrb[2].mxu0 %vm478_vm5, %v265_v29 }
 0x111   : > { %668 = vmatprep.mubr.f32.mxu0 %v4256_v60  ;;  %3380 = vmatpush1.bf16.msra.mxu0 %v3379_v3 }
 0x114   : > { %3240 = vmatmul.mubr.msk.f32.gmra.mrb[4].mxu0 %vm478_vm5, %v266_v56 }
 0x115   : > { %674 = vmatprep.mubr.f32.mxu0 %v4256_v60 }
 0x118   : > { %3241 = vmatmul.mubr.msk.f32.gmra.mrb[6].mxu0 %vm478_vm5, %v267_v58 }
 0x119   : > { %757 = vmatprep.mubr.f32.mxu0 %v4256_v60 }
 0x11c   : > { %3242 = vmatmul.mubr.msk.f32.vlgmr.msra.gmra.mrb[0].mxu0 %vm478_vm5, %v272_v46 }
 0x11d   : > { %763 = vmatprep.mubr.f32.mxu0 %v4256_v60 }
 0x120   : > { %3243 = vmatmul.mubr.msk.f32.gmra.mrb[2].mxu0 %vm478_vm5, %v273_v49 }
 0x121   : > { %769 = vmatprep.mubr.f32.mxu0 %v4256_v60 }
 0x124   : > { %3244 = vmatmul.mubr.msk.f32.gmra.mrb[4].mxu0 %vm478_vm5, %v274_v42 }
 0x125   : > { %775 = vmatprep.mubr.f32.mxu0 %v4256_v60 }
 0x128   : > { %3245 = vmatmul.mubr.msk.f32.gmra.mrb[6].mxu0 %vm478_vm5, %v275_v44 }
 0x129   : > { %1471 = vmatprep.mubr.f32.mxu0 %v4256_v60 }
 0x1ef   : > { %v759_v54 = vpop.f32.mrb[0].mxu0 }
 0x1f0   : > { %v4597_v62 = vadd.f32 %v793_v51, %v759_v54  ;;  %v761_v63 = vpop.f32.mrb[1].mxu0 }
 0x1f1   : > { %v4599_v3 = vadd.f32 %v793_v51, %v761_v63 }
 0x1f2   : > { %v818_v30 = vsub.f32 0.0, %v4597_v62 }
 0x1f3   : > { %v819_v31 = vsub.f32 0.0, %v4599_v3  ;;  %v765_v32 = vpop.f32.mrb[2].mxu0 }
 0x1f4   : > { %v826_v33 = vmul.f32 1.442695, %v818_v30  ;;  %v812_v34 = vadd.f32 %v798_v61, %v765_v32  ;;  %v767_v35 = vpop.f32.mrb[3].mxu0 }
 0x1f5   : > { %v828_v36 = vmul.f32 1.442695, %v819_v31  ;;  %v813_v38 = vadd.f32 %v798_v61, %v767_v35 }
 0x1f6   : > { %3963 = vpow2.f32 %v826_v33  ;;  %v820_v40 = vsub.f32 0.0, %v812_v34 }
 0x1f7   : > { %3965 = vpow2.f32 %v828_v36  ;;  %v821_v41 = vsub.f32 0.0, %v813_v38  ;;  %v771_v43 = vpop.f32.mrb[4].mxu0 }
 0x1f8   : > { %v830_v45 = vmul.f32 1.442695, %v820_v40  ;;  %v4603_v47 = vadd.f32 %v803_v39, %v771_v43  ;;  %v773_v48 = vpop.f32.mrb[5].mxu0 }
 0x1f9   : > { %v832_v50 = vmul.f32 1.442695, %v821_v41  ;;  %v4605_v52 = vadd.f32 %v803_v39, %v773_v48 }
 0x1fa   : > { %3967 = vpow2.f32 %v830_v45  ;;  %v822_v53 = vsub.f32 0.0, %v4603_v47 }
 0x1fb   : > { %3969 = vpow2.f32 %v832_v50  ;;  %v823_v57 = vsub.f32 0.0, %v4605_v52  ;;  %v777_v59 = vpop.f32.mrb[6].mxu0 }
 0x1fc   : > { %v834_v4 = vmul.f32 1.442695, %v822_v53  ;;  %v816_v6 = vadd.f32 %v808_v55, %v777_v59  ;;  %v779_v9 = vpop.f32.mrb[7].mxu0  ;;  %v350_v59 = vld [vmem:[%s5464_s4 + $0x10] sm:$0xff] }
 0x1fd   : > { %v836_v10 = vmul.f32 1.442695, %v823_v57  ;;  %v817_v11 = vadd.f32 %v808_v55, %v779_v9  ;;  %v349_v57 = vld [vmem:[%s5464_s4 + $0x8] sm:$0xff] }
 0x1fe   : > { %3971 = vpow2.f32 %v834_v4  ;;  %v824_v14 = vsub.f32 0.0, %v816_v6  ;;  %v351_v4 = vld [vmem:[%s5464_s4 + $0x18] sm:$0xff] }
 0x1ff   : > { %3973 = vpow2.f32 %v836_v10  ;;  %v825_v15 = vsub.f32 0.0, %v817_v11 }
 0x200   : > { %v3964_v17 = vpop.eup %3963  ;;  %v838_v18 = vmul.f32 1.442695, %v824_v14 }
 0x201   : > { %v3966_v19 = vpop.eup %3965  ;;  %v842_v21 = vadd.f32 1.0, %v3964_v17  ;;  %v840_v22 = vmul.f32 1.442695, %v825_v15 }
 0x202   : > { %v843_v23 = vadd.f32 1.0, %v3966_v19  ;;  %3975 = vpow2.f32 %v838_v18 }
 0x203   : > { %3977 = vrcp.f32 %v842_v21 }
 0x204   : > { %v3968_v24 = vpop.eup %3967  ;;  %3979 = vpow2.f32 %v840_v22 }
 0x205   : > { %v3970_v25 = vpop.eup %3969  ;;  %v844_v26 = vadd.f32 1.0, %v3968_v24  ;;  %3981 = vrcp.f32 %v843_v23 }
 0x206   : > { %v845_v27 = vadd.f32 1.0, %v3970_v25 }
 0x207   : > { %3983 = vrcp.f32 %v844_v26 }
 0x208   : > { %v3972_v28 = vpop.eup %3971  ;;  %3985 = vrcp.f32 %v845_v27 }
 0x209   : > { %v3974_v29 = vpop.eup %3973  ;;  %v846_v56 = vadd.f32 1.0, %v3972_v28 }
 0x20a   : > { %v847_v46 = vadd.f32 1.0, %v3974_v29 }
 0x20b   : > { %3987 = vrcp.f32 %v846_v56 }
 0x20c   : > { %v3976_v58 = vpop.eup %3975 }
 0x20d   : > { %v848_v49 = vadd.f32 1.0, %v3976_v58  ;;  %v3978_v42 = vpop.eup %3977 }
 0x20e   : > { %v3980_v44 = vpop.eup %3979  ;;  %v4610_v30 = vmul.f32 %v3978_v42, %v4597_v62 }
 0x20f   : > { %3989 = vrcp.f32 %v848_v49  ;;  %v3982_v51 = vpop.eup %3981  ;;  %v849_v54 = vadd.f32 1.0, %v3980_v44 }
 0x210   : > { %3991 = vrcp.f32 %v847_v46  ;;  %v4615_v32 = vmul.f32 %v3982_v51, %v4599_v3 }
 0x211   : > { %v3984_v61 = vpop.eup %3983  ;;  %3993 = vrcp.f32 %v849_v54 }
 0x212   : > { %v3986_v63 = vpop.eup %3985  ;;  %v4612_v31 = vmul.f32 %v3984_v61, %v812_v34 }
 0x213   : > { %v4617_v33 = vmul.f32 %v3986_v63, %v813_v38 }
 0x214   : > { %v3403_v35 = vpack.c.bf16 %v4612_v31, %v4610_v30  ;;  %v3731_v36 = vpack.i.bf16 %v4612_v31, %v4610_v30  ;;  %v303_v30 = vld [vmem:[#allocation5 + $0x18] sm:$0xff]  ;;  %v308_v31 = vld [vmem:[#allocation5 + $0x40] sm:$0xff] }
 0x215   : > { %v3736_v39 = vpack.i.bf16 %v4617_v33, %v4615_v32  ;;  %v3401_v62 = vpack.c.bf16 %v4617_v33, %v4615_v32  ;;  %v3988_v34 = vpop.eup %3987  ;;  %v302_v32 = vld [vmem:[#allocation5 + $0x10] sm:$0xff]  ;;  %v309_v33 = vld [vmem:[#allocation5 + $0x48] sm:$0xff] }
 0x216   : > { %3732 = vrot.lane.b32.xlu1 %v3731_v36, %s4255_s9  ;;  %v4630_v40 = vmul.f32 %v3988_v34, %v4603_v47 }
 0x217   : > { %3737 = vrot.lane.b32.xlu0 %v3736_v39, %s4255_s9 }
 0x219   : > { %v3990_v3 = vpop.eup %3989 }
 0x21a   : > { %v3992_v38 = vpop.eup %3991  ;;  %v4632_v41 = vmul.f32 %v3990_v3, %v816_v6 }
 0x21b   : > { %v3994_v43 = vpop.eup %3993  ;;  %v4639_v50 = vmul.f32 %v3992_v38, %v4605_v52  ;;  %v348_v52 = vld [vmem:[%s5464_s4] sm:$0xff] }
 0x21c   : > { %v3407_v45 = vpack.c.bf16 %v4632_v41, %v4630_v40  ;;  %v3741_v48 = vpack.i.bf16 %v4632_v41, %v4630_v40  ;;  %v4641_v53 = vmul.f32 %v3994_v43, %v817_v11 }
 0x21e   : > { %3742 = vrot.lane.b32.xlu1 %v3741_v48, %s4255_s9  ;;  %v3746_v47 = vpack.i.bf16 %v4641_v53, %v4639_v50  ;;  %v3405_v55 = vpack.c.bf16 %v4641_v53, %v4639_v50 }
 0x220   : > { %3747 = vrot.lane.b32.xlu0 %v3746_v47, %s4255_s9  ;;  %s4183_s9 = sshll.u32 %s4263_s26, 4  ;;  %s4184_s9 = int_to_ptr.vmem [resolvable:$false] %s4183_s9 }
 0x221   : > { %s4185_s12 = scalar_lea.vmem %s4184_s9, 2048 }
 0x222   : > { %3752 = vrot.lane.b32.xlu1 %v3731_v36, %s4257_s11 }
 0x224   : > { %3757 = vrot.lane.b32.xlu0 %v3736_v39, %s4257_s11 }
 0x226   : > { %3762 = vrot.lane.b32.xlu1 %v3741_v48, %s4257_s11 }
 0x228   : > { %3767 = vrot.lane.b32.xlu0 %v3746_v47, %s4257_s11  ;;  %v304_v47 = vld [vmem:[#allocation5 + $0x20] sm:$0xff]  ;;  %s4259_s11 = smov 3  }
 0x22a   : > { %1243 = vperm.xlu1 %3730, %v348_v52  }
 0x22c   : > { %1248 = vperm.xlu0 %3729, %v349_v57  }
 0x22e   : > { %1253 = vperm.xlu1 %3730, %v350_v59  }
 0x230   : > { %1258 = vperm.xlu0 %3729, %v351_v4  }
 0x288   : > { %v3733_v6 = vpop.permute.xlu1 %3732 }
 0x289   : > { %v3735_v9 = vunpack.i.h.bf16 %v3733_v6  ;;  %v3734_v10 = vunpack.i.l.bf16 %v3733_v6  ;;  %v3738_v11 = vpop.permute.xlu0 %3737 }
 0x28a   : > { %v3740_v14 = vunpack.i.h.bf16 %v3738_v11  ;;  %v3739_v15 = vunpack.i.l.bf16 %v3738_v11 }
 0x28c   : > { %v914_v17 = vsel %vm461_vm0, %v3734_v10, %v3739_v15  ;;  %v915_v18 = vsel %vm461_vm0, %v3735_v9, %v3740_v14  ;;  %v918_v19 = vsel %vm461_vm0, %v3739_v15, %v3734_v10  ;;  %v919_v21 = vsel %vm461_vm0, %v3740_v14, %v3735_v9  ;;  %v305_v14 = vld [vmem:[#allocation5 + $0x28] sm:$0xff] }
 0x28d   : > { %v3381_v22 = vpack.c.bf16 %v915_v18, %v914_v17  ;;  %v3383_v23 = vpack.c.bf16 %v919_v21, %v918_v19  ;;  %v306_v21 = vld [vmem:[#allocation5 + $0x30] sm:$0xff] }
 0x28f   : > { %3382 = vmatprep.subr.bf16.mxu1 %v3381_v22  ;;  %v307_v22 = vld [vmem:[#allocation5 + $0x38] sm:$0xff] }
 0x290   : > { %3385 = vmatpush1.bf16.msk.msra.mxu1 %vm4523_vm2, %v3383_v23  ;;  %v3743_v24 = vpop.permute.xlu1 %3742  ;;  %v300_v23 = vld [vmem:[#allocation5] sm:$0xff] }
 0x291   : > { %v3745_v25 = vunpack.i.h.bf16 %v3743_v24  ;;  %v3744_v26 = vunpack.i.l.bf16 %v3743_v24 }
 0x292   : > { %v3748_v27 = vpop.permute.xlu0 %3747 }
 0x293   : > { %v3750_v28 = vunpack.i.h.bf16 %v3748_v27  ;;  %v3749_v29 = vunpack.i.l.bf16 %v3748_v27 }
 0x294   : > { %v3753_v56 = vpop.permute.xlu1 %3752 }
 0x295   : > { %v3755_v58 = vunpack.i.h.bf16 %v3753_v56  ;;  %v3754_v46 = vunpack.i.l.bf16 %v3753_v56  ;;  %v921_v49 = vsel %vm461_vm0, %v3750_v28, %v3745_v25  ;;  %v920_v42 = vsel %vm461_vm0, %v3749_v29, %v3744_v26 }
 0x296   : > { %v916_v44 = vsel %vm461_vm0, %v3744_v26, %v3749_v29  ;;  %v917_v51 = vsel %vm461_vm0, %v3745_v25, %v3750_v28  ;;  %v3388_v54 = vpack.c.bf16 %v921_v49, %v920_v42  ;;  %v3758_v61 = vpop.permute.xlu0 %3757  ;;  %vm2259_vm0 = vcmp.lt.s32.totalorder %v4507_v16, 10  ;;  %v331_v16 = vld [vmem:[#allocation5 + $0xf8] sm:$0xff] }
 0x297   : > { %v3386_v63 = vpack.c.bf16 %v917_v51, %v916_v44  ;;  %v3760_v36 = vunpack.i.h.bf16 %v3758_v61  ;;  %v3759_v39 = vunpack.i.l.bf16 %v3758_v61 }
 0x298   : > { %v3763_v34 = vpop.permute.xlu1 %3762 }
 0x299   : > { %3387 = vmatprep.subr.bf16.mxu1 %v3386_v63  ;;  %v3765_v3 = vunpack.i.h.bf16 %v3763_v34  ;;  %v3764_v38 = vunpack.i.l.bf16 %v3763_v34  ;;  %v887_v43 = vsel %vm426_vm3, %v3760_v36, %v3755_v58  ;;  %v886_v48 = vsel %vm426_vm3, %v3759_v39, %v3754_v46 }
 0x29a   : > { %3390 = vmatpush1.bf16.msk.msra.mxu1 %vm4523_vm2, %v3388_v54  ;;  %v882_v52 = vsel %vm426_vm3, %v3754_v46, %v3759_v39  ;;  %v883_v57 = vsel %vm426_vm3, %v3755_v58, %v3760_v36  ;;  %v3393_v59 = vpack.c.bf16 %v887_v43, %v886_v48  ;;  %v3768_v4 = vpop.permute.xlu0 %3767  ;;  %vm5193_vm2 = vmpackc.low %vm2241_vm1, %vm2241_vm1 }
 0x29b   : > { %v3391_v6 = vpack.c.bf16 %v883_v57, %v882_v52  ;;  %v3770_v9 = vunpack.i.h.bf16 %v3768_v4  ;;  %v3769_v10 = vunpack.i.l.bf16 %v3768_v4 }
 0x29d   : > { %3250 = vmatmul.mubr.msk.f32.vlgmr.msra.gmra.mrb[0].mxu1 %vm478_vm5, %v304_v47  ;;  %3392 = vmatprep.subr.bf16.mxu1 %v3391_v6  ;;  %v889_v11 = vsel %vm426_vm3, %v3770_v9, %v3765_v3  ;;  %v888_v37 = vsel %vm426_vm3, %v3769_v10, %v3764_v38  ;;  %v884_v15 = vsel %vm426_vm3, %v3764_v38, %v3769_v10 }
 0x29e   : > { %3395 = vmatpush1.bf16.msk.msra.mxu1 %vm4549_vm6, %v3393_v59  ;;  %1012 = vmatprep.mubr.f32.mxu1 %v4256_v60  ;;  %v3398_v17 = vpack.c.bf16 %v889_v11, %v888_v37  ;;  %v885_v18 = vsel %vm426_vm3, %v3765_v3, %v3770_v9 }
 0x29f   : > { %v3396_v19 = vpack.c.bf16 %v885_v18, %v884_v15 }
 0x2a1   : > { %3251 = vmatmul.mubr.msk.f32.gmra.mrb[2].mxu1 %vm478_vm5, %v305_v14  ;;  %3397 = vmatprep.subr.bf16.mxu1 %v3396_v19 }
 0x2a2   : > { %1018 = vmatprep.mubr.f32.mxu1 %v4256_v60  ;;  %3400 = vmatpush1.bf16.msk.msra.mxu1 %vm4549_vm6, %v3398_v17 }
 0x2a3   : > { %3402 = vmatprep.subr.bf16.mxu1 %v3401_v62  ;;  %v311_v62 = vld [vmem:[#allocation5 + $0x58] sm:$0xff] }
 0x2a5   : > { %3252 = vmatmul.mubr.msk.f32.gmra.mrb[4].mxu1 %vm478_vm5, %v306_v21 }
 0x2a6   : > { %1024 = vmatprep.mubr.f32.mxu1 %v4256_v60 }
 0x2a9   : > { %3253 = vmatmul.mubr.msk.f32.gmra.mrb[6].mxu1 %vm478_vm5, %v307_v22  ;;  %v1244_v40 = vpop.permute.xlu1 %1243 }
 0x2aa   : > { %1107 = vmatprep.mubr.f32.mxu1 %v4256_v60 }
 0x2ab   : > { %v1249_v24 = vpop.permute.xlu0 %1248 }
 0x2ad   : > { %3258 = vmatmul.mubr.msk.f32.vlgmr.msra.gmra.mrb[0].mxu1 %vm478_vm5, %v300_v23  ;;  %v1254_v42 = vpop.permute.xlu1 %1253 }
 0x2ae   : > { %3404 = vmatpush1.bf16.msra.mxu1 %v3403_v35  ;;  %1113 = vmatprep.mubr.f32.mxu1 %v4256_v60  ;;  %v310_v35 = vld [vmem:[#allocation5 + $0x50] sm:$0xff] }
 0x2af   : > { %3406 = vmatprep.subr.bf16.mxu1 %v3405_v55 }
 0x2b1   : > { %3259 = vmatmul.mubr.msk.f32.gmra.mrb[2].mxu1 %vm478_vm5, %v301_v20 }
 0x2b2   : > { %3408 = vmatpush1.bf16.msra.mxu1 %v3407_v45  ;;  %1119 = vmatprep.mubr.f32.mxu1 %v4256_v60 }
 0x2b5   : > { %3260 = vmatmul.mubr.msk.f32.gmra.mrb[4].mxu1 %vm478_vm5, %v302_v32 }
 0x2b6   : > { %1125 = vmatprep.mubr.f32.mxu1 %v4256_v60 }
 0x2b9   : > { %3261 = vmatmul.mubr.msk.f32.gmra.mrb[6].mxu1 %vm478_vm5, %v303_v30 }
 0x2ba   : > { %1208 = vmatprep.mubr.f32.mxu1 %v4256_v60 }
 0x2bd   : > { %3262 = vmatmul.mubr.msk.f32.vlgmr.msra.gmra.mrb[0].mxu1 %vm478_vm5, %v308_v31 }
 0x2be   : > { %1214 = vmatprep.mubr.f32.mxu1 %v4256_v60 }
 0x2c1   : > { %3263 = vmatmul.mubr.msk.f32.gmra.mrb[2].mxu1 %vm478_vm5, %v309_v33 }
 0x2c2   : > { %1220 = vmatprep.mubr.f32.mxu1 %v4256_v60 }
 0x2c5   : > { %3264 = vmatmul.mubr.msk.f32.gmra.mrb[4].mxu1 %vm478_vm5, %v310_v35 }
 0x2c6   : > { %1226 = vmatprep.mubr.f32.mxu1 %v4256_v60 }
 0x2c9   : > { %3265 = vmatmul.mubr.msk.f32.gmra.mrb[6].mxu1 %vm478_vm5, %v311_v62 }
 0x2ca   : > { %1922 = vmatprep.mubr.f32.mxu1 %v4256_v60 }
 0x390   : > { %v1210_v41 = vpop.f32.mrb[0].mxu1 }
 0x391   : > { %v1261_v45 = vadd.f32 %v1244_v40, %v1210_v41  ;;  %v1212_v50 = vpop.f32.mrb[1].mxu1 }
 0x392   : > { %v1262_v53 = vadd.f32 %v1244_v40, %v1212_v50 }
 0x393   : > { %v4742_v55 = vadd.f32 %v1261_v45, %v4425_v2 }
 0x394   : > { %v4745_v25 = vadd.f32 %v1262_v53, %v4439_v12  ;;  %v1216_v26 = vpop.f32.mrb[2].mxu1 }
 0x395   : > { %v1277_v27 = vsub.f32 0.0, %v4742_v55  ;;  %v1263_v28 = vadd.f32 %v1249_v24, %v1216_v26  ;;  %v1218_v29 = vpop.f32.mrb[3].mxu1 }
 0x396   : > { %v1278_v56 = vsub.f32 0.0, %v4745_v25  ;;  %v1264_v58 = vadd.f32 %v1249_v24, %v1218_v29 }
 0x397   : > { %v1285_v46 = vmul.f32 1.442695, %v1277_v27  ;;  %v4750_v49 = vadd.f32 %v1263_v28, %v4429_v5  ;;  %v1259_v5 = vpop.permute.xlu0 %1258 }
 0x398   : > { %v1287_v44 = vmul.f32 1.442695, %v1278_v56  ;;  %v4753_v2 = vadd.f32 %v1264_v58, %v4441_v13  ;;  %v1222_v51 = vpop.f32.mrb[4].mxu1 }
 0x399   : > { %3995 = vpow2.f32 %v1285_v46  ;;  %v1279_v12 = vsub.f32 0.0, %v4750_v49  ;;  %v1265_v54 = vadd.f32 %v1254_v42, %v1222_v51  ;;  %v1224_v61 = vpop.f32.mrb[5].mxu1 }
 0x39a   : > { %3997 = vpow2.f32 %v1287_v44  ;;  %v1280_v63 = vsub.f32 0.0, %v4753_v2  ;;  %v1266_v36 = vadd.f32 %v1254_v42, %v1224_v61 }
 0x39b   : > { %v1289_v39 = vmul.f32 1.442695, %v1279_v12  ;;  %v4758_v34 = vadd.f32 %v1265_v54, %v4421_v0 }
 0x39c   : > { %v1291_v3 = vmul.f32 1.442695, %v1280_v63  ;;  %v4761_v38 = vadd.f32 %v1266_v36, %v4432_v7  ;;  %v1228_v13 = vpop.f32.mrb[6].mxu1 }
 0x39d   : > { %3999 = vpow2.f32 %v1289_v39  ;;  %v1281_v43 = vsub.f32 0.0, %v4758_v34  ;;  %v1267_v48 = vadd.f32 %v1259_v5, %v1228_v13  ;;  %v1230_v47 = vpop.f32.mrb[7].mxu1  ;;  %v342_v13 = vld [vmem:[%s5462_s2 + $0x30] sm:$0xff] }
 0x39e   : > { %4001 = vpow2.f32 %v1291_v3  ;;  %v1282_v52 = vsub.f32 0.0, %v4761_v38  ;;  %v1268_v57 = vadd.f32 %v1259_v5, %v1230_v47  ;;  %v340_v5 = vld [vmem:[%s5462_s2 + $0x20] sm:$0xff]  ;;  %v341_v3 = vld [vmem:[%s5462_s2 + $0x28] sm:$0xff] }
 0x39f   : > { %v1293_v59 = vmul.f32 1.442695, %v1281_v43  ;;  %v4766_v4 = vadd.f32 %v1267_v48, %v4423_v1  ;;  %v343_v43 = vld [vmem:[%s5462_s2 + $0x38] sm:$0xff] }
 0x3a0   : > { %v1295_v0 = vmul.f32 1.442695, %v1282_v52  ;;  %v4769_v6 = vadd.f32 %v1268_v57, %v4434_v8 }
 0x3a1   : > { %4003 = vpow2.f32 %v1293_v59  ;;  %v1283_v7 = vsub.f32 0.0, %v4766_v4 }
 0x3a2   : > { %4005 = vpow2.f32 %v1295_v0  ;;  %v1284_v9 = vsub.f32 0.0, %v4769_v6 }
 0x3a3   : > { %v3996_v10 = vpop.eup %3995  ;;  %v1297_v11 = vmul.f32 1.442695, %v1283_v7 }
 0x3a4   : > { %v3998_v37 = vpop.eup %3997  ;;  %v1301_v14 = vadd.f32 1.0, %v3996_v10  ;;  %v1299_v15 = vmul.f32 1.442695, %v1284_v9 }
 0x3a5   : > { %v1302_v17 = vadd.f32 1.0, %v3998_v37  ;;  %4007 = vpow2.f32 %v1297_v11 }
 0x3a6   : > { %4009 = vrcp.f32 %v1301_v14 }
 0x3a7   : > { %v4000_v18 = vpop.eup %3999  ;;  %4011 = vpow2.f32 %v1299_v15 }
 0x3a8   : > { %v4002_v1 = vpop.eup %4001  ;;  %v1303_v19 = vadd.f32 1.0, %v4000_v18  ;;  %4013 = vrcp.f32 %v1302_v17 }
 0x3a9   : > { %v1304_v8 = vadd.f32 1.0, %v4002_v1 }
 0x3aa   : > { %4015 = vrcp.f32 %v1303_v19 }
 0x3ab   : > { %v4004_v21 = vpop.eup %4003  ;;  %4017 = vrcp.f32 %v1304_v8 }
 0x3ac   : > { %v4006_v22 = vpop.eup %4005  ;;  %v1305_v23 = vadd.f32 1.0, %v4004_v21 }
 0x3ad   : > { %v1306_v32 = vadd.f32 1.0, %v4006_v22 }
 0x3ae   : > { %4019 = vrcp.f32 %v1305_v23 }
 0x3af   : > { %v4008_v20 = vpop.eup %4007 }
 0x3b0   : > { %v1307_v30 = vadd.f32 1.0, %v4008_v20  ;;  %v4010_v31 = vpop.eup %4009 }
 0x3b1   : > { %v4012_v33 = vpop.eup %4011  ;;  %v4774_v45 = vmul.f32 %v4010_v31, %v4742_v55 }
 0x3b2   : > { %4021 = vrcp.f32 %v1307_v30  ;;  %v4014_v35 = vpop.eup %4013  ;;  %v1308_v62 = vadd.f32 1.0, %v4012_v33 }
 0x3b3   : > { %4023 = vrcp.f32 %v1306_v32  ;;  %v4780_v53 = vmul.f32 %v4014_v35, %v4745_v25 }
 0x3b4   : > { %v4016_v40 = vpop.eup %4015  ;;  %4025 = vrcp.f32 %v1308_v62 }
 0x3b5   : > { %v4018_v41 = vpop.eup %4017  ;;  %v4777_v50 = vmul.f32 %v4016_v40, %v4750_v49 }
 0x3b6   : > { %v4783_v24 = vmul.f32 %v4018_v41, %v4753_v2 }
 0x3b7   : > { %v3771_v26 = vpack.i.bf16 %v4777_v50, %v4774_v45  ;;  %v3431_v27 = vpack.c.bf16 %v4777_v50, %v4774_v45  ;;  %v279_v45 = vld [vmem:[#allocation2 + $0x78] sm:$0xff]  ;;  %v284_v50 = vld [vmem:[#allocation2 + $0xa0] sm:$0xff] }
 0x3b8   : > { %v3776_v28 = vpack.i.bf16 %v4783_v24, %v4780_v53  ;;  %v3429_v29 = vpack.c.bf16 %v4783_v24, %v4780_v53  ;;  %v4020_v56 = vpop.eup %4019  ;;  %v277_v53 = vld [vmem:[#allocation2 + $0x68] sm:$0xff]  ;;  %v278_v24 = vld [vmem:[#allocation2 + $0x70] sm:$0xff] }
 0x3b9   : > { %3772 = vrot.lane.b32.xlu1 %v3771_v26, %s4259_s11  ;;  %v4796_v42 = vmul.f32 %v4020_v56, %v4758_v34 }
 0x3ba   : > { %3777 = vrot.lane.b32.xlu0 %v3776_v28, %s4259_s11 }
 0x3bc   : > { %v4022_v58 = vpop.eup %4021 }
 0x3bd   : > { %v4024_v46 = vpop.eup %4023  ;;  %v4799_v44 = vmul.f32 %v4022_v58, %v4766_v4 }
 0x3be   : > { %v4026_v51 = vpop.eup %4025  ;;  %v4806_v61 = vmul.f32 %v4024_v46, %v4761_v38 }
 0x3bf   : > { %v3781_v12 = vpack.i.bf16 %v4799_v44, %v4796_v42  ;;  %v3435_v54 = vpack.c.bf16 %v4799_v44, %v4796_v42  ;;  %v4809_v63 = vmul.f32 %v4026_v51, %v4769_v6  ;;  %v287_v42 = vld [vmem:[#allocation2 + $0xb8] sm:$0xff] }
 0x3c1   : > { %3782 = vrot.lane.b32.xlu1 %v3781_v12, %s4259_s11  ;;  %v3786_v36 = vpack.i.bf16 %v4809_v63, %v4806_v61  ;;  %v3433_v39 = vpack.c.bf16 %v4809_v63, %v4806_v61 }
 0x3c3   : > { %3787 = vrot.lane.b32.xlu0 %v3786_v36, %s4259_s11 }
 0x3c5   : > { %3792 = vrot.lane.b32.xlu1 %v3771_v26, %s4260_s13 }
 0x3c7   : > { %3797 = vrot.lane.b32.xlu0 %v3776_v28, %s4260_s13 }
 0x3c9   : > { %3802 = vrot.lane.b32.xlu1 %v3781_v12, %s4260_s13  ;;  %v280_v12 = vld [vmem:[#allocation2 + $0x80] sm:$0xff] }
 0x3cb   : > { %3807 = vrot.lane.b32.xlu0 %v3786_v36, %s4260_s13 }
 0x3cd   : > { %1708 = vperm.xlu1 %3730, %v340_v5  }
 0x3cf   : > { %1713 = vperm.xlu0 %3729, %v341_v3  }
 0x3d1   : > { %1718 = vperm.xlu1 %3730, %v342_v13  }
 0x3d3   : > { %1723 = vperm.xlu0 %3729, %v343_v43  }
 0x42b   : > { %v3773_v48 = vpop.permute.xlu1 %3772 }
 0x42c   : > { %v3775_v47 = vunpack.i.h.bf16 %v3773_v48  ;;  %v3774_v52 = vunpack.i.l.bf16 %v3773_v48  ;;  %v3778_v57 = vpop.permute.xlu0 %3777  ;;  %v313_v48 = vld [vmem:[#allocation5 + $0x68] sm:$0xff] }
 0x42d   : > { %v3780_v59 = vunpack.i.h.bf16 %v3778_v57  ;;  %v3779_v0 = vunpack.i.l.bf16 %v3778_v57 }
 0x42f   : > { %v1384_v7 = vsel %vm1378_vm7, %v3780_v59, %v3775_v47  ;;  %v1383_v9 = vsel %vm1378_vm7, %v3779_v0, %v3774_v52  ;;  %v1379_v10 = vsel %vm1378_vm7, %v3774_v52, %v3779_v0  ;;  %v1380_v11 = vsel %vm1378_vm7, %v3775_v47, %v3780_v59  ;;  %v281_v0 = vld [vmem:[#allocation2 + $0x88] sm:$0xff] }
 0x430   : > { %v3411_v37 = vpack.c.bf16 %v1384_v7, %v1383_v9  ;;  %v3409_v14 = vpack.c.bf16 %v1380_v11, %v1379_v10 }
 0x432   : > { %3410 = vmatprep.subr.bf16.mxu0 %v3409_v14  ;;  %v283_v14 = vld [vmem:[#allocation2 + $0x98] sm:$0xff] }
 0x433   : > { %3413 = vmatpush1.bf16.msk.msra.mxu0 %vm4843_vm9, %v3411_v37  ;;  %v3783_v17 = vpop.permute.xlu1 %3782  ;;  %v282_v37 = vld [vmem:[#allocation2 + $0x90] sm:$0xff] }
 0x434   : > { %v3785_v18 = vunpack.i.h.bf16 %v3783_v17  ;;  %v3784_v1 = vunpack.i.l.bf16 %v3783_v17  ;;  %v276_v17 = vld [vmem:[#allocation2 + $0x60] sm:$0xff] }
 0x435   : > { %v3788_v19 = vpop.permute.xlu0 %3787 }
 0x436   : > { %v3790_v8 = vunpack.i.h.bf16 %v3788_v19  ;;  %v3789_v21 = vunpack.i.l.bf16 %v3788_v19 }
 0x437   : > { %v3793_v22 = vpop.permute.xlu1 %3792 }
 0x438   : > { %v3795_v23 = vunpack.i.h.bf16 %v3793_v22  ;;  %v3794_v20 = vunpack.i.l.bf16 %v3793_v22  ;;  %v1386_v32 = vsel %vm1378_vm7, %v3790_v8, %v3785_v18  ;;  %v1385_v30 = vsel %vm1378_vm7, %v3789_v21, %v3784_v1 }
 0x439   : > { %v1381_v31 = vsel %vm1378_vm7, %v3784_v1, %v3789_v21  ;;  %v1382_v33 = vsel %vm1378_vm7, %v3785_v18, %v3790_v8  ;;  %v3416_v35 = vpack.c.bf16 %v1386_v32, %v1385_v30  ;;  %v3798_v62 = vpop.permute.xlu0 %3797 }
 0x43a   : > { %v3414_v40 = vpack.c.bf16 %v1382_v33, %v1381_v31  ;;  %v3800_v41 = vunpack.i.h.bf16 %v3798_v62  ;;  %v3799_v26 = vunpack.i.l.bf16 %v3798_v62 }
 0x43b   : > { %v3803_v28 = vpop.permute.xlu1 %3802 }
 0x43c   : > { %3415 = vmatprep.subr.bf16.mxu0 %v3414_v40  ;;  %v3805_v56 = vunpack.i.h.bf16 %v3803_v28  ;;  %v3804_v58 = vunpack.i.l.bf16 %v3803_v28  ;;  %v1349_v46 = vsel %vm1343_vm10, %v3800_v41, %v3795_v23  ;;  %v1348_v51 = vsel %vm1343_vm10, %v3799_v26, %v3794_v20 }
 0x43d   : > { %3418 = vmatpush1.bf16.msk.msra.mxu0 %vm4843_vm9, %v3416_v35  ;;  %v1344_v36 = vsel %vm1343_vm10, %v3794_v20, %v3799_v26  ;;  %v1345_v5 = vsel %vm1343_vm10, %v3795_v23, %v3800_v41  ;;  %v3421_v3 = vpack.c.bf16 %v1349_v46, %v1348_v51  ;;  %v3808_v13 = vpop.permute.xlu0 %3807 }
 0x43e   : > { %v3419_v43 = vpack.c.bf16 %v1345_v5, %v1344_v36  ;;  %v3810_v47 = vunpack.i.h.bf16 %v3808_v13  ;;  %v3809_v52 = vunpack.i.l.bf16 %v3808_v13 }
 0x440   : > { %3270 = vmatmul.mubr.msk.f32.vlgmr.msra.gmra.mrb[8].mxu0 %vm478_vm5, %v280_v12  ;;  %3420 = vmatprep.subr.bf16.mxu0 %v3419_v43  ;;  %v1351_v57 = vsel %vm1343_vm10, %v3810_v47, %v3805_v56  ;;  %v1350_v59 = vsel %vm1343_vm10, %v3809_v52, %v3804_v58  ;;  %v1346_v7 = vsel %vm1343_vm10, %v3804_v58, %v3809_v52 }
 0x441   : > { %3423 = vmatpush1.bf16.msk.msra.mxu0 %vm4869_vm12, %v3421_v3  ;;  %1477 = vmatprep.mubr.f32.mxu0 %v4256_v60  ;;  %v3426_v9 = vpack.c.bf16 %v1351_v57, %v1350_v59  ;;  %v1347_v10 = vsel %vm1343_vm10, %v3805_v56, %v3810_v47 }
 0x442   : > { %v3424_v11 = vpack.c.bf16 %v1347_v10, %v1346_v7 }
 0x444   : > { %3271 = vmatmul.mubr.msk.f32.gmra.mrb[10].mxu0 %vm478_vm5, %v281_v0  ;;  %3425 = vmatprep.subr.bf16.mxu0 %v3424_v11 }
 0x445   : > { %1483 = vmatprep.mubr.f32.mxu0 %v4256_v60  ;;  %3428 = vmatpush1.bf16.msk.msra.mxu0 %vm4869_vm12, %v3426_v9 }
 0x446   : > { %3430 = vmatprep.subr.bf16.mxu0 %v3429_v29  ;;  %v286_v29 = vld [vmem:[#allocation2 + $0xb0] sm:$0xff] }
 0x448   : > { %3272 = vmatmul.mubr.msk.f32.gmra.mrb[12].mxu0 %vm478_vm5, %v282_v37 }
 0x449   : > { %1489 = vmatprep.mubr.f32.mxu0 %v4256_v60 }
 0x44c   : > { %3273 = vmatmul.mubr.msk.f32.gmra.mrb[14].mxu0 %vm478_vm5, %v283_v14  ;;  %v1709_v44 = vpop.permute.xlu1 %1708 }
 0x44d   : > { %1572 = vmatprep.mubr.f32.mxu0 %v4256_v60 }
 0x44e   : > { %v1714_v1 = vpop.permute.xlu0 %1713 }
 0x450   : > { %3278 = vmatmul.mubr.msk.f32.vlgmr.msra.gmra.mrb[8].mxu0 %vm478_vm5, %v276_v17  ;;  %v1719_v31 = vpop.permute.xlu1 %1718 }
 0x451   : > { %3432 = vmatpush1.bf16.msra.mxu0 %v3431_v27  ;;  %1578 = vmatprep.mubr.f32.mxu0 %v4256_v60  ;;  %v285_v27 = vld [vmem:[#allocation2 + $0xa8] sm:$0xff] }
 0x452   : > { %3434 = vmatprep.subr.bf16.mxu0 %v3433_v39  ;;  %v1724_v58 = vpop.permute.xlu0 %1723 }
 0x454   : > { %3279 = vmatmul.mubr.msk.f32.gmra.mrb[10].mxu0 %vm478_vm5, %v277_v53 }
 0x455   : > { %3436 = vmatpush1.bf16.msra.mxu0 %v3435_v54  ;;  %1584 = vmatprep.mubr.f32.mxu0 %v4256_v60 }
 0x458   : > { %3280 = vmatmul.mubr.msk.f32.gmra.mrb[12].mxu0 %vm478_vm5, %v278_v24 }
 0x459   : > { %1590 = vmatprep.mubr.f32.mxu0 %v4256_v60 }
 0x45c   : > { %3281 = vmatmul.mubr.msk.f32.gmra.mrb[14].mxu0 %vm478_vm5, %v279_v45 }
 0x45d   : > { %1673 = vmatprep.mubr.f32.mxu0 %v4256_v60 }
 0x460   : > { %3282 = vmatmul.mubr.msk.f32.vlgmr.msra.gmra.mrb[8].mxu0 %vm478_vm5, %v284_v50 }
 0x461   : > { %1679 = vmatprep.mubr.f32.mxu0 %v4256_v60 }
 0x464   : > { %3283 = vmatmul.mubr.msk.f32.gmra.mrb[10].mxu0 %vm478_vm5, %v285_v27 }
 0x465   : > { %1685 = vmatprep.mubr.f32.mxu0 %v4256_v60 }
 0x468   : > { %3284 = vmatmul.mubr.msk.f32.gmra.mrb[12].mxu0 %vm478_vm5, %v286_v29 }
 0x469   : > { %1691 = vmatprep.mubr.f32.mxu0 %v4256_v60 }
 0x46c   : > { %3285 = vmatmul.mubr.msk.f32.gmra.mrb[14].mxu0 %vm478_vm5, %v287_v42 }
 0x46d   : > { %2387 = vmatprep.mubr.f32.mxu0 %v4256_v60 }
 0x533   : > { %v1675_v54 = vpop.f32.mrb[8].mxu0 }
 0x534   : > { %v4921_v61 = vadd.f32 %v1709_v44, %v1675_v54  ;;  %v1677_v63 = vpop.f32.mrb[9].mxu0 }
 0x535   : > { %v4923_v39 = vadd.f32 %v1709_v44, %v1677_v63 }
 0x536   : > { %v1734_v18 = vsub.f32 0.0, %v4921_v61 }
 0x537   : > { %v1735_v19 = vsub.f32 0.0, %v4923_v39  ;;  %v1681_v8 = vpop.f32.mrb[10].mxu0 }
 0x538   : > { %v1742_v21 = vmul.f32 1.442695, %v1734_v18  ;;  %v1728_v22 = vadd.f32 %v1714_v1, %v1681_v8  ;;  %v1683_v23 = vpop.f32.mrb[11].mxu0 }
 0x539   : > { %v1744_v20 = vmul.f32 1.442695, %v1735_v19  ;;  %v1729_v32 = vadd.f32 %v1714_v1, %v1683_v23 }
 0x53a   : > { %4027 = vpow2.f32 %v1742_v21  ;;  %v1736_v30 = vsub.f32 0.0, %v1728_v22 }
 0x53b   : > { %4029 = vpow2.f32 %v1744_v20  ;;  %v1737_v33 = vsub.f32 0.0, %v1729_v32  ;;  %v1687_v35 = vpop.f32.mrb[12].mxu0 }
 0x53c   : > { %v1746_v62 = vmul.f32 1.442695, %v1736_v30  ;;  %v4927_v40 = vadd.f32 %v1719_v31, %v1687_v35  ;;  %v1689_v41 = vpop.f32.mrb[13].mxu0 }
 0x53d   : > { %v1748_v26 = vmul.f32 1.442695, %v1737_v33  ;;  %v4929_v28 = vadd.f32 %v1719_v31, %v1689_v41 }
 0x53e   : > { %4031 = vpow2.f32 %v1746_v62  ;;  %v1738_v56 = vsub.f32 0.0, %v4927_v40 }
 0x53f   : > { %4033 = vpow2.f32 %v1748_v26  ;;  %v1739_v46 = vsub.f32 0.0, %v4929_v28  ;;  %v1693_v51 = vpop.f32.mrb[14].mxu0 }
 0x540   : > { %v1750_v12 = vmul.f32 1.442695, %v1738_v56  ;;  %v1732_v36 = vadd.f32 %v1724_v58, %v1693_v51  ;;  %v1695_v5 = vpop.f32.mrb[15].mxu0  ;;  %v354_v51 = vld [vmem:[%s5464_s4 + $0x30] sm:$0xff] }
 0x541   : > { %v1752_v3 = vmul.f32 1.442695, %v1739_v46  ;;  %v1733_v13 = vadd.f32 %v1724_v58, %v1695_v5  ;;  %v353_v46 = vld [vmem:[%s5464_s4 + $0x28] sm:$0xff] }
 0x542   : > { %4035 = vpow2.f32 %v1750_v12  ;;  %v1740_v43 = vsub.f32 0.0, %v1732_v36  ;;  %v355_v12 = vld [vmem:[%s5464_s4 + $0x38] sm:$0xff] }
 0x543   : > { %4037 = vpow2.f32 %v1752_v3  ;;  %v1741_v47 = vsub.f32 0.0, %v1733_v13 }
 0x544   : > { %v4028_v52 = vpop.eup %4027  ;;  %v1754_v57 = vmul.f32 1.442695, %v1740_v43 }
 0x545   : > { %v4030_v59 = vpop.eup %4029  ;;  %v1758_v0 = vadd.f32 1.0, %v4028_v52  ;;  %v1756_v7 = vmul.f32 1.442695, %v1741_v47 }
 0x546   : > { %v1759_v9 = vadd.f32 1.0, %v4030_v59  ;;  %4039 = vpow2.f32 %v1754_v57 }
 0x547   : > { %4041 = vrcp.f32 %v1758_v0 }
 0x548   : > { %v4032_v10 = vpop.eup %4031  ;;  %4043 = vpow2.f32 %v1756_v7 }
 0x549   : > { %v4034_v11 = vpop.eup %4033  ;;  %v1760_v37 = vadd.f32 1.0, %v4032_v10  ;;  %4045 = vrcp.f32 %v1759_v9 }
 0x54a   : > { %v1761_v14 = vadd.f32 1.0, %v4034_v11 }
 0x54b   : > { %4047 = vrcp.f32 %v1760_v37 }
 0x54c   : > { %v4036_v17 = vpop.eup %4035  ;;  %4049 = vrcp.f32 %v1761_v14 }
 0x54d   : > { %v4038_v53 = vpop.eup %4037  ;;  %v1762_v24 = vadd.f32 1.0, %v4036_v17 }
 0x54e   : > { %v1763_v50 = vadd.f32 1.0, %v4038_v53 }
 0x54f   : > { %4051 = vrcp.f32 %v1762_v24 }
 0x550   : > { %v4040_v45 = vpop.eup %4039 }
 0x551   : > { %v1764_v27 = vadd.f32 1.0, %v4040_v45  ;;  %v4042_v29 = vpop.eup %4041 }
 0x552   : > { %v4044_v42 = vpop.eup %4043  ;;  %v4934_v1 = vmul.f32 %v4042_v29, %v4921_v61 }
 0x553   : > { %4053 = vrcp.f32 %v1764_v27  ;;  %v4046_v44 = vpop.eup %4045  ;;  %v1765_v54 = vadd.f32 1.0, %v4044_v42 }
 0x554   : > { %4055 = vrcp.f32 %v1763_v50  ;;  %v4939_v8 = vmul.f32 %v4046_v44, %v4923_v39 }
 0x555   : > { %v4048_v63 = vpop.eup %4047  ;;  %4057 = vrcp.f32 %v1765_v54 }
 0x556   : > { %v4050_v18 = vpop.eup %4049  ;;  %v4936_v19 = vmul.f32 %v4048_v63, %v1728_v22 }
 0x557   : > { %v4941_v21 = vmul.f32 %v4050_v18, %v1729_v32 }
 0x558   : > { %v3459_v23 = vpack.c.bf16 %v4936_v19, %v4934_v1  ;;  %v3811_v20 = vpack.i.bf16 %v4936_v19, %v4934_v1  ;;  %v315_v1 = vld [vmem:[#allocation5 + $0x78] sm:$0xff]  ;;  %v320_v19 = vld [vmem:[#allocation5 + $0xa0] sm:$0xff] }
 0x559   : > { %v3816_v30 = vpack.i.bf16 %v4941_v21, %v4939_v8  ;;  %v3457_v61 = vpack.c.bf16 %v4941_v21, %v4939_v8  ;;  %v4052_v22 = vpop.eup %4051  ;;  %v314_v8 = vld [vmem:[#allocation5 + $0x70] sm:$0xff]  ;;  %v321_v21 = vld [vmem:[#allocation5 + $0xa8] sm:$0xff] }
 0x55a   : > { %3812 = vrot.lane.b32.xlu1 %v3811_v20, %s4259_s11  ;;  %v4954_v31 = vmul.f32 %v4052_v22, %v4927_v40 }
 0x55b   : > { %3817 = vrot.lane.b32.xlu0 %v3816_v30, %s4259_s11 }
 0x55d   : > { %v4054_v39 = vpop.eup %4053 }
 0x55e   : > { %v4056_v32 = vpop.eup %4055  ;;  %v4956_v33 = vmul.f32 %v4054_v39, %v1732_v36 }
 0x55f   : > { %v4058_v35 = vpop.eup %4057  ;;  %v4963_v26 = vmul.f32 %v4056_v32, %v4929_v28  ;;  %v352_v28 = vld [vmem:[%s5464_s4 + $0x20] sm:$0xff] }
 0x560   : > { %v3463_v62 = vpack.c.bf16 %v4956_v33, %v4954_v31  ;;  %v3821_v41 = vpack.i.bf16 %v4956_v33, %v4954_v31  ;;  %v4965_v56 = vmul.f32 %v4058_v35, %v1733_v13 }
 0x562   : > { %3822 = vrot.lane.b32.xlu1 %v3821_v41, %s4259_s11  ;;  %v3826_v40 = vpack.i.bf16 %v4965_v56, %v4963_v26  ;;  %v3461_v58 = vpack.c.bf16 %v4965_v56, %v4963_v26 }
 0x564   : > { %3827 = vrot.lane.b32.xlu0 %v3826_v40, %s4259_s11 }
 0x566   : > { %3832 = vrot.lane.b32.xlu1 %v3811_v20, %s4260_s13 }
 0x568   : > { %3837 = vrot.lane.b32.xlu0 %v3816_v30, %s4260_s13 }
 0x56a   : > { %3842 = vrot.lane.b32.xlu1 %v3821_v41, %s4260_s13 }
 0x56c   : > { %3847 = vrot.lane.b32.xlu0 %v3826_v40, %s4260_s13  ;;  %v316_v40 = vld [vmem:[#allocation5 + $0x80] sm:$0xff]  ;;  %s4261_s13 = smov 5  }
 0x56e   : > { %2159 = vperm.xlu1 %3730, %v352_v28  }
 0x570   : > { %2164 = vperm.xlu0 %3729, %v353_v46  }
 0x572   : > { %2169 = vperm.xlu1 %3730, %v354_v51  }
 0x574   : > { %2174 = vperm.xlu0 %3729, %v355_v12  }
 0x5cc   : > { %v3813_v36 = vpop.permute.xlu1 %3812 }
 0x5cd   : > { %v3815_v5 = vunpack.i.h.bf16 %v3813_v36  ;;  %v3814_v3 = vunpack.i.l.bf16 %v3813_v36  ;;  %v3818_v13 = vpop.permute.xlu0 %3817 }
 0x5ce   : > { %v3820_v43 = vunpack.i.h.bf16 %v3818_v13  ;;  %v3819_v47 = vunpack.i.l.bf16 %v3818_v13 }
 0x5d0   : > { %v1835_v52 = vsel %vm1378_vm7, %v3820_v43, %v3815_v5  ;;  %v1834_v57 = vsel %vm1378_vm7, %v3819_v47, %v3814_v3  ;;  %v1830_v59 = vsel %vm1378_vm7, %v3814_v3, %v3819_v47  ;;  %v1831_v0 = vsel %vm1378_vm7, %v3815_v5, %v3820_v43  ;;  %v317_v43 = vld [vmem:[#allocation5 + $0x88] sm:$0xff] }
 0x5d1   : > { %v3439_v7 = vpack.c.bf16 %v1835_v52, %v1834_v57  ;;  %v3437_v9 = vpack.c.bf16 %v1831_v0, %v1830_v59  ;;  %v318_v0 = vld [vmem:[#allocation5 + $0x90] sm:$0xff] }
 0x5d3   : > { %3438 = vmatprep.subr.bf16.mxu1 %v3437_v9  ;;  %v312_v9 = vld [vmem:[#allocation5 + $0x60] sm:$0xff] }
 0x5d4   : > { %3441 = vmatpush1.bf16.msk.msra.mxu1 %vm4843_vm9, %v3439_v7  ;;  %v3823_v10 = vpop.permute.xlu1 %3822  ;;  %v319_v7 = vld [vmem:[#allocation5 + $0x98] sm:$0xff] }
 0x5d5   : > { %v3825_v11 = vunpack.i.h.bf16 %v3823_v10  ;;  %v3824_v37 = vunpack.i.l.bf16 %v3823_v10 }
 0x5d6   : > { %v3828_v14 = vpop.permute.xlu0 %3827 }
 0x5d7   : > { %v3830_v17 = vunpack.i.h.bf16 %v3828_v14  ;;  %v3829_v53 = vunpack.i.l.bf16 %v3828_v14 }
 0x5d8   : > { %v3833_v24 = vpop.permute.xlu1 %3832 }
 0x5d9   : > { %v3835_v45 = vunpack.i.h.bf16 %v3833_v24  ;;  %v3834_v50 = vunpack.i.l.bf16 %v3833_v24  ;;  %v1837_v27 = vsel %vm1378_vm7, %v3830_v17, %v3825_v11  ;;  %v1836_v29 = vsel %vm1378_vm7, %v3829_v53, %v3824_v37 }
 0x5da   : > { %v1832_v42 = vsel %vm1378_vm7, %v3824_v37, %v3829_v53  ;;  %v1833_v44 = vsel %vm1378_vm7, %v3825_v11, %v3830_v17  ;;  %v3444_v54 = vpack.c.bf16 %v1837_v27, %v1836_v29  ;;  %v3838_v63 = vpop.permute.xlu0 %3837 }
 0x5db   : > { %v3442_v18 = vpack.c.bf16 %v1833_v44, %v1832_v42  ;;  %v3840_v20 = vunpack.i.h.bf16 %v3838_v63  ;;  %v3839_v30 = vunpack.i.l.bf16 %v3838_v63 }
 0x5dc   : > { %v3843_v22 = vpop.permute.xlu1 %3842 }
 0x5dd   : > { %3443 = vmatprep.subr.bf16.mxu1 %v3442_v18  ;;  %v3845_v39 = vunpack.i.h.bf16 %v3843_v22  ;;  %v3844_v32 = vunpack.i.l.bf16 %v3843_v22  ;;  %v1803_v35 = vsel %vm1343_vm10, %v3840_v20, %v3835_v45  ;;  %v1802_v41 = vsel %vm1343_vm10, %v3839_v30, %v3834_v50 }
 0x5de   : > { %3446 = vmatpush1.bf16.msk.msra.mxu1 %vm4843_vm9, %v3444_v54  ;;  %v1798_v28 = vsel %vm1343_vm10, %v3834_v50, %v3839_v30  ;;  %v1799_v46 = vsel %vm1343_vm10, %v3835_v45, %v3840_v20  ;;  %v3449_v51 = vpack.c.bf16 %v1803_v35, %v1802_v41  ;;  %v3848_v12 = vpop.permute.xlu0 %3847 }
 0x5df   : > { %v3447_v36 = vpack.c.bf16 %v1799_v46, %v1798_v28  ;;  %v3850_v5 = vunpack.i.h.bf16 %v3848_v12  ;;  %v3849_v3 = vunpack.i.l.bf16 %v3848_v12 }
 0x5e1   : > { %3290 = vmatmul.mubr.msk.f32.vlgmr.msra.gmra.mrb[8].mxu1 %vm478_vm5, %v316_v40  ;;  %3448 = vmatprep.subr.bf16.mxu1 %v3447_v36  ;;  %v1805_v13 = vsel %vm1343_vm10, %v3850_v5, %v3845_v39  ;;  %v1804_v15 = vsel %vm1343_vm10, %v3849_v3, %v3844_v32  ;;  %v1800_v47 = vsel %vm1343_vm10, %v3844_v32, %v3849_v3 }
 0x5e2   : > { %3451 = vmatpush1.bf16.msk.msra.mxu1 %vm4869_vm12, %v3449_v51  ;;  %1928 = vmatprep.mubr.f32.mxu1 %v4256_v60  ;;  %v3454_v52 = vpack.c.bf16 %v1805_v13, %v1804_v15  ;;  %v1801_v57 = vsel %vm1343_vm10, %v3845_v39, %v3850_v5 }
 0x5e3   : > { %v3452_v59 = vpack.c.bf16 %v1801_v57, %v1800_v47 }
 0x5e5   : > { %3291 = vmatmul.mubr.msk.f32.gmra.mrb[10].mxu1 %vm478_vm5, %v317_v43  ;;  %3453 = vmatprep.subr.bf16.mxu1 %v3452_v59 }
 0x5e6   : > { %1934 = vmatprep.mubr.f32.mxu1 %v4256_v60  ;;  %3456 = vmatpush1.bf16.msk.msra.mxu1 %vm4869_vm12, %v3454_v52 }
 0x5e7   : > { %3458 = vmatprep.subr.bf16.mxu1 %v3457_v61  ;;  %v323_v61 = vld [vmem:[#allocation5 + $0xb8] sm:$0xff] }
 0x5e9   : > { %3292 = vmatmul.mubr.msk.f32.gmra.mrb[12].mxu1 %vm478_vm5, %v318_v0 }
 0x5ea   : > { %1940 = vmatprep.mubr.f32.mxu1 %v4256_v60 }
 0x5ed   : > { %3293 = vmatmul.mubr.msk.f32.gmra.mrb[14].mxu1 %vm478_vm5, %v319_v7  ;;  %v2160_v31 = vpop.permute.xlu1 %2159 }
 0x5ee   : > { %2023 = vmatprep.mubr.f32.mxu1 %v4256_v60 }
 0x5ef   : > { %v2165_v10 = vpop.permute.xlu0 %2164 }
 0x5f1   : > { %3298 = vmatmul.mubr.msk.f32.vlgmr.msra.gmra.mrb[8].mxu1 %vm478_vm5, %v312_v9  ;;  %v2170_v29 = vpop.permute.xlu1 %2169 }
 0x5f2   : > { %3460 = vmatpush1.bf16.msra.mxu1 %v3459_v23  ;;  %2029 = vmatprep.mubr.f32.mxu1 %v4256_v60  ;;  %v322_v23 = vld [vmem:[#allocation5 + $0xb0] sm:$0xff] }
 0x5f3   : > { %3462 = vmatprep.subr.bf16.mxu1 %v3461_v58 }
 0x5f5   : > { %3299 = vmatmul.mubr.msk.f32.gmra.mrb[10].mxu1 %vm478_vm5, %v313_v48 }
 0x5f6   : > { %3464 = vmatpush1.bf16.msra.mxu1 %v3463_v62  ;;  %2035 = vmatprep.mubr.f32.mxu1 %v4256_v60 }
 0x5f9   : > { %3300 = vmatmul.mubr.msk.f32.gmra.mrb[12].mxu1 %vm478_vm5, %v314_v8 }
 0x5fa   : > { %2041 = vmatprep.mubr.f32.mxu1 %v4256_v60 }
 0x5fd   : > { %3301 = vmatmul.mubr.msk.f32.gmra.mrb[14].mxu1 %vm478_vm5, %v315_v1 }
 0x5fe   : > { %2124 = vmatprep.mubr.f32.mxu1 %v4256_v60 }
 0x601   : > { %3302 = vmatmul.mubr.msk.f32.vlgmr.msra.gmra.mrb[8].mxu1 %vm478_vm5, %v320_v19 }
 0x602   : > { %2130 = vmatprep.mubr.f32.mxu1 %v4256_v60 }
 0x605   : > { %3303 = vmatmul.mubr.msk.f32.gmra.mrb[10].mxu1 %vm478_vm5, %v321_v21 }
 0x606   : > { %2136 = vmatprep.mubr.f32.mxu1 %v4256_v60 }
 0x609   : > { %3304 = vmatmul.mubr.msk.f32.gmra.mrb[12].mxu1 %vm478_vm5, %v322_v23 }
 0x60a   : > { %2142 = vmatprep.mubr.f32.mxu1 %v4256_v60 }
 0x60d   : > { %3305 = vmatmul.mubr.msk.f32.gmra.mrb[14].mxu1 %vm478_vm5, %v323_v61 }
 0x60e   : > { %2838 = vmatprep.mubr.f32.mxu1 %v4256_v60 }
 0x6d4   : > { %v2126_v33 = vpop.f32.mrb[8].mxu1 }
 0x6d5   : > { %v2177_v62 = vadd.f32 %v2160_v31, %v2126_v33  ;;  %v2128_v26 = vpop.f32.mrb[9].mxu1 }
 0x6d6   : > { %v2178_v56 = vadd.f32 %v2160_v31, %v2128_v26 }
 0x6d7   : > { %v5066_v58 = vadd.f32 %v2177_v62, %v4742_v55 }
 0x6d8   : > { %v5069_v11 = vadd.f32 %v2178_v56, %v4745_v25  ;;  %v2132_v37 = vpop.f32.mrb[10].mxu1 }
 0x6d9   : > { %v2193_v14 = vsub.f32 0.0, %v5066_v58  ;;  %v2179_v17 = vadd.f32 %v2165_v10, %v2132_v37  ;;  %v2134_v53 = vpop.f32.mrb[11].mxu1 }
 0x6da   : > { %v2194_v24 = vsub.f32 0.0, %v5069_v11  ;;  %v2180_v45 = vadd.f32 %v2165_v10, %v2134_v53 }
 0x6db   : > { %v2201_v50 = vmul.f32 1.442695, %v2193_v14  ;;  %v5074_v27 = vadd.f32 %v2179_v17, %v4750_v49  ;;  %v2175_v49 = vpop.permute.xlu0 %2174 }
 0x6dc   : > { %v2203_v42 = vmul.f32 1.442695, %v2194_v24  ;;  %v5077_v55 = vadd.f32 %v2180_v45, %v4753_v2  ;;  %v2138_v44 = vpop.f32.mrb[12].mxu1 }
 0x6dd   : > { %4059 = vpow2.f32 %v2201_v50  ;;  %v2195_v25 = vsub.f32 0.0, %v5074_v27  ;;  %v2181_v54 = vadd.f32 %v2170_v29, %v2138_v44  ;;  %v2140_v63 = vpop.f32.mrb[13].mxu1 }
 0x6de   : > { %4061 = vpow2.f32 %v2203_v42  ;;  %v2196_v18 = vsub.f32 0.0, %v5077_v55  ;;  %v2182_v20 = vadd.f32 %v2170_v29, %v2140_v63 }
 0x6df   : > { %v2205_v30 = vmul.f32 1.442695, %v2195_v25  ;;  %v5082_v22 = vadd.f32 %v2181_v54, %v4758_v34 }
 0x6e0   : > { %v2207_v39 = vmul.f32 1.442695, %v2196_v18  ;;  %v5085_v32 = vadd.f32 %v2182_v20, %v4761_v38  ;;  %v2144_v2 = vpop.f32.mrb[14].mxu1 }
 0x6e1   : > { %4063 = vpow2.f32 %v2205_v30  ;;  %v2197_v35 = vsub.f32 0.0, %v5082_v22  ;;  %v2183_v41 = vadd.f32 %v2175_v49, %v2144_v2  ;;  %v2146_v40 = vpop.f32.mrb[15].mxu1  ;;  %v346_v2 = vld [vmem:[%s5462_s2 + $0x50] sm:$0xff] }
 0x6e2   : > { %4065 = vpow2.f32 %v2207_v39  ;;  %v2198_v28 = vsub.f32 0.0, %v5085_v32  ;;  %v2184_v46 = vadd.f32 %v2175_v49, %v2146_v40  ;;  %v344_v49 = vld [vmem:[%s5462_s2 + $0x40] sm:$0xff]  ;;  %v345_v39 = vld [vmem:[%s5462_s2 + $0x48] sm:$0xff] }
 0x6e3   : > { %v2209_v51 = vmul.f32 1.442695, %v2197_v35  ;;  %v5090_v12 = vadd.f32 %v2183_v41, %v4766_v4  ;;  %v347_v35 = vld [vmem:[%s5462_s2 + $0x58] sm:$0xff] }
 0x6e4   : > { %v2211_v34 = vmul.f32 1.442695, %v2198_v28  ;;  %v5093_v36 = vadd.f32 %v2184_v46, %v4769_v6 }
 0x6e5   : > { %4067 = vpow2.f32 %v2209_v51  ;;  %v2199_v38 = vsub.f32 0.0, %v5090_v12 }
 0x6e6   : > { %4069 = vpow2.f32 %v2211_v34  ;;  %v2200_v5 = vsub.f32 0.0, %v5093_v36 }
 0x6e7   : > { %v4060_v3 = vpop.eup %4059  ;;  %v2213_v13 = vmul.f32 1.442695, %v2199_v38 }
 0x6e8   : > { %v4062_v15 = vpop.eup %4061  ;;  %v2217_v43 = vadd.f32 1.0, %v4060_v3  ;;  %v2215_v47 = vmul.f32 1.442695, %v2200_v5 }
 0x6e9   : > { %v2218_v52 = vadd.f32 1.0, %v4062_v15  ;;  %4071 = vpow2.f32 %v2213_v13 }
 0x6ea   : > { %4073 = vrcp.f32 %v2217_v43 }
 0x6eb   : > { %v4064_v57 = vpop.eup %4063  ;;  %4075 = vpow2.f32 %v2215_v47 }
 0x6ec   : > { %v4066_v4 = vpop.eup %4065  ;;  %v2219_v59 = vadd.f32 1.0, %v4064_v57  ;;  %4077 = vrcp.f32 %v2218_v52 }
 0x6ed   : > { %v2220_v6 = vadd.f32 1.0, %v4066_v4 }
 0x6ee   : > { %4079 = vrcp.f32 %v2219_v59 }
 0x6ef   : > { %v4068_v0 = vpop.eup %4067  ;;  %4081 = vrcp.f32 %v2220_v6 }
 0x6f0   : > { %v4070_v7 = vpop.eup %4069  ;;  %v2221_v9 = vadd.f32 1.0, %v4068_v0 }
 0x6f1   : > { %v2222_v8 = vadd.f32 1.0, %v4070_v7 }
 0x6f2   : > { %4083 = vrcp.f32 %v2221_v9 }
 0x6f3   : > { %v4072_v48 = vpop.eup %4071 }
 0x6f4   : > { %v2223_v1 = vadd.f32 1.0, %v4072_v48  ;;  %v4074_v19 = vpop.eup %4073 }
 0x6f5   : > { %v4076_v21 = vpop.eup %4075  ;;  %v5098_v62 = vmul.f32 %v4074_v19, %v5066_v58 }
 0x6f6   : > { %4085 = vrcp.f32 %v2223_v1  ;;  %v4078_v23 = vpop.eup %4077  ;;  %v2224_v61 = vadd.f32 1.0, %v4076_v21 }
 0x6f7   : > { %4087 = vrcp.f32 %v2222_v8  ;;  %v5104_v56 = vmul.f32 %v4078_v23, %v5069_v11 }
 0x6f8   : > { %v4080_v31 = vpop.eup %4079  ;;  %4089 = vrcp.f32 %v2224_v61 }
 0x6f9   : > { %v4082_v33 = vpop.eup %4081  ;;  %v5101_v26 = vmul.f32 %v4080_v31, %v5074_v27 }
 0x6fa   : > { %v5107_v10 = vmul.f32 %v4082_v33, %v5077_v55 }
 0x6fb   : > { %v3851_v37 = vpack.i.bf16 %v5101_v26, %v5098_v62  ;;  %v3487_v14 = vpack.c.bf16 %v5101_v26, %v5098_v62  ;;  %v291_v62 = vld [vmem:[#allocation2 + $0xd8] sm:$0xff]  ;;  %v296_v26 = vld [vmem:[#allocation2 + $0x100] sm:$0xff] }
 0x6fc   : > { %v3856_v17 = vpack.i.bf16 %v5107_v10, %v5104_v56  ;;  %v3485_v53 = vpack.c.bf16 %v5107_v10, %v5104_v56  ;;  %v4084_v24 = vpop.eup %4083  ;;  %v289_v56 = vld [vmem:[#allocation2 + $0xc8] sm:$0xff]  ;;  %v290_v10 = vld [vmem:[#allocation2 + $0xd0] sm:$0xff] }
 0x6fd   : > { %3852 = vrot.lane.b32.xlu1 %v3851_v37, %s4261_s13  ;;  %v5120_v29 = vmul.f32 %v4084_v24, %v5082_v22 }
 0x6fe   : > { %3857 = vrot.lane.b32.xlu0 %v3856_v17, %s4261_s13 }
 0x700   : > { %v4086_v45 = vpop.eup %4085 }
 0x701   : > { %v4088_v50 = vpop.eup %4087  ;;  %v5123_v42 = vmul.f32 %v4086_v45, %v5090_v12 }
 0x702   : > { %v4090_v44 = vpop.eup %4089  ;;  %v5130_v63 = vmul.f32 %v4088_v50, %v5085_v32 }
 0x703   : > { %v3861_v25 = vpack.i.bf16 %v5123_v42, %v5120_v29  ;;  %v3491_v54 = vpack.c.bf16 %v5123_v42, %v5120_v29  ;;  %v5133_v18 = vmul.f32 %v4090_v44, %v5093_v36  ;;  %v299_v29 = vld [vmem:[#allocation2 + $0x118] sm:$0xff] }
 0x705   : > { %3862 = vrot.lane.b32.xlu1 %v3861_v25, %s4261_s13  ;;  %v3866_v20 = vpack.i.bf16 %v5133_v18, %v5130_v63  ;;  %v3489_v30 = vpack.c.bf16 %v5133_v18, %v5130_v63 }
 0x707   : > { %3867 = vrot.lane.b32.xlu0 %v3866_v20, %s4261_s13 }
 0x709   : > { %3872 = vrot.lane.b32.xlu1 %v3851_v37, %s4262_s15 }
 0x70b   : > { %3877 = vrot.lane.b32.xlu0 %v3856_v17, %s4262_s15 }
 0x70d   : > { %3882 = vrot.lane.b32.xlu1 %v3861_v25, %s4262_s15  ;;  %v292_v25 = vld [vmem:[#allocation2 + $0xe0] sm:$0xff] }
 0x70f   : > { %3887 = vrot.lane.b32.xlu0 %v3866_v20, %s4262_s15 }
 0x711   : > { %2624 = vperm.xlu1 %3730, %v344_v49  }
 0x713   : > { %2629 = vperm.xlu0 %3729, %v345_v39  }
 0x715   : > { %2634 = vperm.xlu1 %3730, %v346_v2  }
 0x717   : > { %2639 = vperm.xlu0 %3729, %v347_v35  }
 0x76f   : > { %v3853_v41 = vpop.permute.xlu1 %3852 }
 0x770   : > { %v3855_v40 = vunpack.i.h.bf16 %v3853_v41  ;;  %v3854_v28 = vunpack.i.l.bf16 %v3853_v41  ;;  %v3858_v46 = vpop.permute.xlu0 %3857  ;;  %v325_v41 = vld [vmem:[#allocation5 + $0xc8] sm:$0xff] }
 0x771   : > { %v3860_v51 = vunpack.i.h.bf16 %v3858_v46  ;;  %v3859_v34 = vunpack.i.l.bf16 %v3858_v46 }
 0x773   : > { %v2300_v38 = vsel %vm2294_vm13, %v3860_v51, %v3855_v40  ;;  %v2299_v5 = vsel %vm2294_vm13, %v3859_v34, %v3854_v28  ;;  %v2295_v3 = vsel %vm2294_vm13, %v3854_v28, %v3859_v34  ;;  %v2296_v13 = vsel %vm2294_vm13, %v3855_v40, %v3860_v51  ;;  %v293_v34 = vld [vmem:[#allocation2 + $0xe8] sm:$0xff] }
 0x774   : > { %v3467_v15 = vpack.c.bf16 %v2300_v38, %v2299_v5  ;;  %v3465_v43 = vpack.c.bf16 %v2296_v13, %v2295_v3 }
 0x776   : > { %3466 = vmatprep.subr.bf16.mxu0 %v3465_v43  ;;  %v295_v43 = vld [vmem:[#allocation2 + $0xf8] sm:$0xff] }
 0x777   : > { %3469 = vmatpush1.bf16.msk.msra.mxu0 %vm5167_vm15, %v3467_v15  ;;  %v3863_v52 = vpop.permute.xlu1 %3862  ;;  %v294_v15 = vld [vmem:[#allocation2 + $0xf0] sm:$0xff] }
 0x778   : > { %v3865_v57 = vunpack.i.h.bf16 %v3863_v52  ;;  %v3864_v4 = vunpack.i.l.bf16 %v3863_v52  ;;  %v288_v52 = vld [vmem:[#allocation2 + $0xc0] sm:$0xff] }
 0x779   : > { %v3868_v59 = vpop.permute.xlu0 %3867 }
 0x77a   : > { %v3870_v6 = vunpack.i.h.bf16 %v3868_v59  ;;  %v3869_v0 = vunpack.i.l.bf16 %v3868_v59 }
 0x77b   : > { %v3873_v7 = vpop.permute.xlu1 %3872 }
 0x77c   : > { %v3875_v9 = vunpack.i.h.bf16 %v3873_v7  ;;  %v3874_v48 = vunpack.i.l.bf16 %v3873_v7  ;;  %v2302_v8 = vsel %vm2294_vm13, %v3870_v6, %v3865_v57  ;;  %v2301_v1 = vsel %vm2294_vm13, %v3869_v0, %v3864_v4 }
 0x77d   : > { %v2297_v19 = vsel %vm2294_vm13, %v3864_v4, %v3869_v0  ;;  %v2298_v21 = vsel %vm2294_vm13, %v3865_v57, %v3870_v6  ;;  %v3472_v23 = vpack.c.bf16 %v2302_v8, %v2301_v1  ;;  %v3878_v61 = vpop.permute.xlu0 %3877 }
 0x77e   : > { %v3470_v31 = vpack.c.bf16 %v2298_v21, %v2297_v19  ;;  %v3880_v33 = vunpack.i.h.bf16 %v3878_v61  ;;  %v3879_v37 = vunpack.i.l.bf16 %v3878_v61 }
 0x77f   : > { %v3883_v17 = vpop.permute.xlu1 %3882 }
 0x780   : > { %3471 = vmatprep.subr.bf16.mxu0 %v3470_v31  ;;  %v3885_v24 = vunpack.i.h.bf16 %v3883_v17  ;;  %v3884_v45 = vunpack.i.l.bf16 %v3883_v17  ;;  %v2265_v50 = vsel %vm2259_vm0, %v3880_v33, %v3875_v9  ;;  %v2264_v44 = vsel %vm2259_vm0, %v3879_v37, %v3874_v48 }
 0x781   : > { %3474 = vmatpush1.bf16.msk.msra.mxu0 %vm5167_vm15, %v3472_v23  ;;  %v2260_v20 = vsel %vm2259_vm0, %v3874_v48, %v3879_v37  ;;  %v2261_v49 = vsel %vm2259_vm0, %v3875_v9, %v3880_v33  ;;  %v3477_v39 = vpack.c.bf16 %v2265_v50, %v2264_v44  ;;  %v3888_v2 = vpop.permute.xlu0 %3887 }
 0x782   : > { %v3475_v35 = vpack.c.bf16 %v2261_v49, %v2260_v20  ;;  %v3890_v40 = vunpack.i.h.bf16 %v3888_v2  ;;  %v3889_v28 = vunpack.i.l.bf16 %v3888_v2 }
 0x784   : > { %3310 = vmatmul.mubr.msk.f32.vlgmr.msra.gmra.mrb[16].mxu0 %vm478_vm5, %v292_v25  ;;  %3476 = vmatprep.subr.bf16.mxu0 %v3475_v35  ;;  %v2267_v46 = vsel %vm2259_vm0, %v3890_v40, %v3885_v24  ;;  %v2266_v51 = vsel %vm2259_vm0, %v3889_v28, %v3884_v45  ;;  %v2262_v38 = vsel %vm2259_vm0, %v3884_v45, %v3889_v28 }
 0x785   : > { %3479 = vmatpush1.bf16.msk.msra.mxu0 %vm5193_vm2, %v3477_v39  ;;  %2393 = vmatprep.mubr.f32.mxu0 %v4256_v60  ;;  %v3482_v5 = vpack.c.bf16 %v2267_v46, %v2266_v51  ;;  %v2263_v3 = vsel %vm2259_vm0, %v3885_v24, %v3890_v40 }
 0x786   : > { %v3480_v13 = vpack.c.bf16 %v2263_v3, %v2262_v38 }
 0x788   : > { %3311 = vmatmul.mubr.msk.f32.gmra.mrb[18].mxu0 %vm478_vm5, %v293_v34  ;;  %3481 = vmatprep.subr.bf16.mxu0 %v3480_v13 }
 0x789   : > { %2399 = vmatprep.mubr.f32.mxu0 %v4256_v60  ;;  %3484 = vmatpush1.bf16.msk.msra.mxu0 %vm5193_vm2, %v3482_v5 }
 0x78a   : > { %3486 = vmatprep.subr.bf16.mxu0 %v3485_v53  ;;  %v298_v53 = vld [vmem:[#allocation2 + $0x110] sm:$0xff] }
 0x78c   : > { %3312 = vmatmul.mubr.msk.f32.gmra.mrb[20].mxu0 %vm478_vm5, %v294_v15 }
 0x78d   : > { %2405 = vmatprep.mubr.f32.mxu0 %v4256_v60 }
 0x790   : > { %3313 = vmatmul.mubr.msk.f32.gmra.mrb[22].mxu0 %vm478_vm5, %v295_v43  ;;  %v2625_v42 = vpop.permute.xlu1 %2624 }
 0x791   : > { %2488 = vmatprep.mubr.f32.mxu0 %v4256_v60 }
 0x792   : > { %v2630_v4 = vpop.permute.xlu0 %2629 }
 0x794   : > { %3318 = vmatmul.mubr.msk.f32.vlgmr.msra.gmra.mrb[16].mxu0 %vm478_vm5, %v288_v52  ;;  %v2635_v19 = vpop.permute.xlu1 %2634 }
 0x795   : > { %3488 = vmatpush1.bf16.msra.mxu0 %v3487_v14  ;;  %2494 = vmatprep.mubr.f32.mxu0 %v4256_v60  ;;  %v297_v14 = vld [vmem:[#allocation2 + $0x108] sm:$0xff] }
 0x796   : > { %3490 = vmatprep.subr.bf16.mxu0 %v3489_v30  ;;  %v2640_v45 = vpop.permute.xlu0 %2639 }
 0x798   : > { %3319 = vmatmul.mubr.msk.f32.gmra.mrb[18].mxu0 %vm478_vm5, %v289_v56 }
 0x799   : > { %3492 = vmatpush1.bf16.msra.mxu0 %v3491_v54  ;;  %2500 = vmatprep.mubr.f32.mxu0 %v4256_v60 }
 0x79c   : > { %3320 = vmatmul.mubr.msk.f32.gmra.mrb[20].mxu0 %vm478_vm5, %v290_v10 }
 0x79d   : > { %2506 = vmatprep.mubr.f32.mxu0 %v4256_v60 }
 0x7a0   : > { %3321 = vmatmul.mubr.msk.f32.gmra.mrb[22].mxu0 %vm478_vm5, %v291_v62 }
 0x7a1   : > { %2589 = vmatprep.mubr.f32.mxu0 %v4256_v60 }
 0x7a4   : > { %3322 = vmatmul.mubr.msk.f32.vlgmr.msra.gmra.mrb[16].mxu0 %vm478_vm5, %v296_v26 }
 0x7a5   : > { %2595 = vmatprep.mubr.f32.mxu0 %v4256_v60 }
 0x7a8   : > { %3323 = vmatmul.mubr.msk.f32.gmra.mrb[18].mxu0 %vm478_vm5, %v297_v14 }
 0x7a9   : > { %2601 = vmatprep.mubr.f32.mxu0 %v4256_v60 }
 0x7ac   : > { %3324 = vmatmul.mubr.msk.f32.gmra.mrb[20].mxu0 %vm478_vm5, %v298_v53 }
 0x7ad   : > { %2607 = vmatprep.mubr.f32.mxu0 %v4256_v60 }
 0x7b0   : > { %3325 = vmatmul.mubr.msk.f32.gmra.mrb[22].mxu0 %vm478_vm5, %v299_v29 }
 0x877   : > { %v2591_v54 = vpop.f32.mrb[16].mxu0 }
 0x878   : > { %v5244_v63 = vadd.f32 %v2625_v42, %v2591_v54  ;;  %v2593_v18 = vpop.f32.mrb[17].mxu0 }
 0x879   : > { %v5246_v30 = vadd.f32 %v2625_v42, %v2593_v18 }
 0x87a   : > { %v2650_v57 = vsub.f32 0.0, %v5244_v63 }
 0x87b   : > { %v2651_v59 = vsub.f32 0.0, %v5246_v30  ;;  %v2597_v6 = vpop.f32.mrb[18].mxu0 }
 0x87c   : > { %v2658_v0 = vmul.f32 1.442695, %v2650_v57  ;;  %v2644_v7 = vadd.f32 %v2630_v4, %v2597_v6  ;;  %v2599_v9 = vpop.f32.mrb[19].mxu0 }
 0x87d   : > { %v2660_v48 = vmul.f32 1.442695, %v2651_v59  ;;  %v2645_v8 = vadd.f32 %v2630_v4, %v2599_v9 }
 0x87e   : > { %4091 = vpow2.f32 %v2658_v0  ;;  %v2652_v1 = vsub.f32 0.0, %v2644_v7 }
 0x87f   : > { %4093 = vpow2.f32 %v2660_v48  ;;  %v2653_v21 = vsub.f32 0.0, %v2645_v8  ;;  %v2603_v23 = vpop.f32.mrb[20].mxu0 }
 0x880   : > { %v2662_v61 = vmul.f32 1.442695, %v2652_v1  ;;  %v5250_v31 = vadd.f32 %v2635_v19, %v2603_v23  ;;  %v2605_v33 = vpop.f32.mrb[21].mxu0 }
 0x881   : > { %v2664_v37 = vmul.f32 1.442695, %v2653_v21  ;;  %v5252_v17 = vadd.f32 %v2635_v19, %v2605_v33 }
 0x882   : > { %4095 = vpow2.f32 %v2662_v61  ;;  %v2654_v24 = vsub.f32 0.0, %v5250_v31 }
 0x883   : > { %4097 = vpow2.f32 %v2664_v37  ;;  %v2655_v50 = vsub.f32 0.0, %v5252_v17  ;;  %v2609_v44 = vpop.f32.mrb[22].mxu0 }
 0x884   : > { %v2666_v25 = vmul.f32 1.442695, %v2654_v24  ;;  %v2648_v20 = vadd.f32 %v2640_v45, %v2609_v44  ;;  %v2611_v49 = vpop.f32.mrb[23].mxu0  ;;  %v358_v44 = vld [vmem:[%s5464_s4 + $0x50] sm:$0xff] }
 0x885   : > { %v2668_v39 = vmul.f32 1.442695, %v2655_v50  ;;  %v2649_v2 = vadd.f32 %v2640_v45, %v2611_v49  ;;  %v357_v50 = vld [vmem:[%s5464_s4 + $0x48] sm:$0xff] }
 0x886   : > { %4099 = vpow2.f32 %v2666_v25  ;;  %v2656_v35 = vsub.f32 0.0, %v2648_v20  ;;  %v359_v25 = vld [vmem:[%s5464_s4 + $0x58] sm:$0xff] }
 0x887   : > { %4101 = vpow2.f32 %v2668_v39  ;;  %v2657_v40 = vsub.f32 0.0, %v2649_v2 }
 0x888   : > { %v4092_v28 = vpop.eup %4091  ;;  %v2670_v46 = vmul.f32 1.442695, %v2656_v35 }
 0x889   : > { %v4094_v51 = vpop.eup %4093  ;;  %v2674_v34 = vadd.f32 1.0, %v4092_v28  ;;  %v2672_v38 = vmul.f32 1.442695, %v2657_v40 }
 0x88a   : > { %v2675_v5 = vadd.f32 1.0, %v4094_v51  ;;  %4103 = vpow2.f32 %v2670_v46 }
 0x88b   : > { %4105 = vrcp.f32 %v2674_v34 }
 0x88c   : > { %v4096_v3 = vpop.eup %4095  ;;  %4107 = vpow2.f32 %v2672_v38 }
 0x88d   : > { %v4098_v13 = vpop.eup %4097  ;;  %v2676_v15 = vadd.f32 1.0, %v4096_v3  ;;  %4109 = vrcp.f32 %v2675_v5 }
 0x88e   : > { %v2677_v43 = vadd.f32 1.0, %v4098_v13 }
 0x88f   : > { %4111 = vrcp.f32 %v2676_v15 }
 0x890   : > { %v4100_v52 = vpop.eup %4099  ;;  %4113 = vrcp.f32 %v2677_v43 }
 0x891   : > { %v4102_v56 = vpop.eup %4101  ;;  %v2678_v10 = vadd.f32 1.0, %v4100_v52 }
 0x892   : > { %v2679_v26 = vadd.f32 1.0, %v4102_v56 }
 0x893   : > { %4115 = vrcp.f32 %v2678_v10 }
 0x894   : > { %v4104_v62 = vpop.eup %4103 }
 0x895   : > { %v2680_v14 = vadd.f32 1.0, %v4104_v62  ;;  %v4106_v53 = vpop.eup %4105 }
 0x896   : > { %v4108_v29 = vpop.eup %4107  ;;  %v5257_v4 = vmul.f32 %v4106_v53, %v5244_v63 }
 0x897   : > { %4117 = vrcp.f32 %v2680_v14  ;;  %v4110_v42 = vpop.eup %4109  ;;  %v2681_v54 = vadd.f32 1.0, %v4108_v29 }
 0x898   : > { %4119 = vrcp.f32 %v2679_v26  ;;  %v5262_v6 = vmul.f32 %v4110_v42, %v5246_v30 }
 0x899   : > { %v4112_v18 = vpop.eup %4111  ;;  %4121 = vrcp.f32 %v2681_v54 }
 0x89a   : > { %v4114_v57 = vpop.eup %4113  ;;  %v5259_v59 = vmul.f32 %v4112_v18, %v2644_v7 }
 0x89b   : > { %v5264_v0 = vmul.f32 %v4114_v57, %v2645_v8 }
 0x89c   : > { %v3515_v9 = vpack.c.bf16 %v5259_v59, %v5257_v4  ;;  %v3891_v48 = vpack.i.bf16 %v5259_v59, %v5257_v4  ;;  %v327_v4 = vld [vmem:[#allocation5 + $0xd8] sm:$0xff]  ;;  %v332_v59 = vld [vmem:[#allocation5 + $0x100] sm:$0xff] }
 0x89d   : > { %v3896_v1 = vpack.i.bf16 %v5264_v0, %v5262_v6  ;;  %v3513_v63 = vpack.c.bf16 %v5264_v0, %v5262_v6  ;;  %v4116_v7 = vpop.eup %4115  ;;  %v326_v6 = vld [vmem:[#allocation5 + $0xd0] sm:$0xff]  ;;  %v333_v0 = vld [vmem:[#allocation5 + $0x108] sm:$0xff] }
 0x89e   : > { %3892 = vrot.lane.b32.xlu1 %v3891_v48, %s4261_s13  ;;  %v5277_v19 = vmul.f32 %v4116_v7, %v5250_v31 }
 0x89f   : > { %3897 = vrot.lane.b32.xlu0 %v3896_v1, %s4261_s13 }
 0x8a1   : > { %v4118_v30 = vpop.eup %4117 }
 0x8a2   : > { %v4120_v8 = vpop.eup %4119  ;;  %v5279_v21 = vmul.f32 %v4118_v30, %v2648_v20 }
 0x8a3   : > { %v4122_v23 = vpop.eup %4121  ;;  %v5286_v37 = vmul.f32 %v4120_v8, %v5252_v17  ;;  %v356_v17 = vld [vmem:[%s5464_s4 + $0x40] sm:$0xff] }
 0x8a4   : > { %v3519_v61 = vpack.c.bf16 %v5279_v21, %v5277_v19  ;;  %v3901_v33 = vpack.i.bf16 %v5279_v21, %v5277_v19  ;;  %v5288_v24 = vmul.f32 %v4122_v23, %v2649_v2 }
 0x8a6   : > { %3902 = vrot.lane.b32.xlu1 %v3901_v33, %s4261_s13  ;;  %v3906_v31 = vpack.i.bf16 %v5288_v24, %v5286_v37  ;;  %v3517_v45 = vpack.c.bf16 %v5288_v24, %v5286_v37 }
 0x8a8   : > { %3907 = vrot.lane.b32.xlu0 %v3906_v31, %s4261_s13 }
 0x8aa   : > { %3912 = vrot.lane.b32.xlu1 %v3891_v48, %s4262_s15 }
 0x8ac   : > { %3917 = vrot.lane.b32.xlu0 %v3896_v1, %s4262_s15 }
 0x8ae   : > { %3922 = vrot.lane.b32.xlu1 %v3901_v33, %s4262_s15 }
 0x8b0   : > { %3927 = vrot.lane.b32.xlu0 %v3906_v31, %s4262_s15  ;;  %v328_v31 = vld [vmem:[#allocation5 + $0xe0] sm:$0xff]  ;;  %s245_s15 = sand.u32 1, %s4241_s19  }
 0x8b1   : > { %s3223_s17 = sshll.u32 %s245_s15, 6  ;;  %s5419_s22 = scalar_lea.sflag [#allocation4], %s245_s15 }
 0x8b2   : > { %3075 = vperm.xlu1 %3730, %v356_v17   ;;  %s5392_s7 = scalar_lea.vmem [#allocation7], %s3223_s17 }
 0x8b3   : > { %s3131_s23 = sshll.u32 %s5392_s7, 4  ;;  %s5406_s23 = int_to_ptr.vmem [resolvable:$true] %s3131_s23 }
 0x8b4   : > { %3080 = vperm.xlu0 %3729, %v357_v50   ;;  %s4179_s30 = scalar_lea.vmem %s5406_s23, 1024  ;;  %p4186_p4 = scmp.lt.s32.totalorder %s5406_s23, %s4184_s9 }
 0x8b5   : > { %p4180_p12 = scmp.ne.s32.totalorder %s5406_s23, %s4179_s30  ;;  %p4187_p7 = scmp.lt.s32.totalorder %s4185_s12, %s4179_s30 }
 0x8b6   : > { %3085 = vperm.xlu1 %3730, %v358_v44  }
 0x8b7   : > { %p4181_p2 = pnand %p4180_p12, %p5490_p1  ;;  %p4188_p8 = por %p4187_p7, %p4186_p4 }
 0x8b8   : > { %3090 = vperm.xlu0 %3729, %v359_v25  }
 0x8b9   : > { %p4182_p3 = pneg %p4181_p2 }
 0x8bb   : > { %p4189_p11 = pnand %p4188_p8, %p4182_p3 }
 0x910   : > { %v3893_v20 = vpop.permute.xlu1 %3892 }
 0x911   : > { %v3895_v49 = vunpack.i.h.bf16 %v3893_v20  ;;  %v3894_v39 = vunpack.i.l.bf16 %v3893_v20  ;;  %v3898_v2 = vpop.permute.xlu0 %3897 }
 0x912   : > { %v3900_v35 = vunpack.i.h.bf16 %v3898_v2  ;;  %v3899_v40 = vunpack.i.l.bf16 %v3898_v2 }
 0x914   : > { %v2751_v28 = vsel %vm2294_vm13, %v3900_v35, %v3895_v49  ;;  %v2750_v46 = vsel %vm2294_vm13, %v3899_v40, %v3894_v39  ;;  %v2746_v51 = vsel %vm2294_vm13, %v3894_v39, %v3899_v40  ;;  %v2747_v34 = vsel %vm2294_vm13, %v3895_v49, %v3900_v35  ;;  %v329_v35 = vld [vmem:[#allocation5 + $0xe8] sm:$0xff] }
 0x915   : > { %v3495_v38 = vpack.c.bf16 %v2751_v28, %v2750_v46  ;;  %v3493_v5 = vpack.c.bf16 %v2747_v34, %v2746_v51  ;;  %v330_v34 = vld [vmem:[#allocation5 + $0xf0] sm:$0xff] }
 0x917   : > { %3494 = vmatprep.subr.bf16.mxu1 %v3493_v5 }
 0x918   : > { %3497 = vmatpush1.bf16.msk.msra.mxu1 %vm5167_vm15, %v3495_v38  ;;  %v3903_v3 = vpop.permute.xlu1 %3902  ;;  %v324_v38 = vld [vmem:[#allocation5 + $0xc0] sm:$0xff] }
 0x919   : > { %v3905_v13 = vunpack.i.h.bf16 %v3903_v3  ;;  %v3904_v15 = vunpack.i.l.bf16 %v3903_v3 }
 0x91a   : > { %v3908_v43 = vpop.permute.xlu0 %3907 }
 0x91b   : > { %v3910_v52 = vunpack.i.h.bf16 %v3908_v43  ;;  %v3909_v56 = vunpack.i.l.bf16 %v3908_v43 }
 0x91c   : > { %v3913_v10 = vpop.permute.xlu1 %3912 }
 0x91d   : > { %v3915_v62 = vunpack.i.h.bf16 %v3913_v10  ;;  %v3914_v26 = vunpack.i.l.bf16 %v3913_v10  ;;  %v2753_v14 = vsel %vm2294_vm13, %v3910_v52, %v3905_v13  ;;  %v2752_v53 = vsel %vm2294_vm13, %v3909_v56, %v3904_v15 }
 0x91e   : > { %v2748_v29 = vsel %vm2294_vm13, %v3904_v15, %v3909_v56  ;;  %v2749_v42 = vsel %vm2294_vm13, %v3905_v13, %v3910_v52  ;;  %v3500_v54 = vpack.c.bf16 %v2753_v14, %v2752_v53  ;;  %v3918_v18 = vpop.permute.xlu0 %3917 }
 0x91f   : > { %v3498_v57 = vpack.c.bf16 %v2749_v42, %v2748_v29  ;;  %v3920_v48 = vunpack.i.h.bf16 %v3918_v18  ;;  %v3919_v1 = vunpack.i.l.bf16 %v3918_v18 }
 0x920   : > { %v3923_v7 = vpop.permute.xlu1 %3922 }
 0x921   : > { %3499 = vmatprep.subr.bf16.mxu1 %v3498_v57  ;;  %v3925_v30 = vunpack.i.h.bf16 %v3923_v7  ;;  %v3924_v8 = vunpack.i.l.bf16 %v3923_v7  ;;  %v2719_v23 = vsel %vm2259_vm0, %v3920_v48, %v3915_v62  ;;  %v2718_v33 = vsel %vm2259_vm0, %v3919_v1, %v3914_v26 }
 0x922   : > { %3502 = vmatpush1.bf16.msk.msra.mxu1 %vm5167_vm15, %v3500_v54  ;;  %v2714_v17 = vsel %vm2259_vm0, %v3914_v26, %v3919_v1  ;;  %v2715_v50 = vsel %vm2259_vm0, %v3915_v62, %v3920_v48  ;;  %v3505_v44 = vpack.c.bf16 %v2719_v23, %v2718_v33  ;;  %v3928_v25 = vpop.permute.xlu0 %3927 }
 0x923   : > { %v3503_v20 = vpack.c.bf16 %v2715_v50, %v2714_v17  ;;  %v3930_v49 = vunpack.i.h.bf16 %v3928_v25  ;;  %v3929_v39 = vunpack.i.l.bf16 %v3928_v25 }
 0x925   : > { %3330 = vmatmul.mubr.msk.f32.vlgmr.msra.gmra.mrb[16].mxu1 %vm478_vm5, %v328_v31  ;;  %3504 = vmatprep.subr.bf16.mxu1 %v3503_v20  ;;  %v2721_v2 = vsel %vm2259_vm0, %v3930_v49, %v3925_v30  ;;  %v2720_v47 = vsel %vm2259_vm0, %v3929_v39, %v3924_v8  ;;  %v2716_v40 = vsel %vm2259_vm0, %v3924_v8, %v3929_v39 }
 0x926   : > { %3507 = vmatpush1.bf16.msk.msra.mxu1 %vm5193_vm2, %v3505_v44  ;;  %2844 = vmatprep.mubr.f32.mxu1 %v4256_v60  ;;  %v3510_v28 = vpack.c.bf16 %v2721_v2, %v2720_v47  ;;  %v2717_v46 = vsel %vm2259_vm0, %v3925_v30, %v3930_v49 }
 0x927   : > { %v3508_v51 = vpack.c.bf16 %v2717_v46, %v2716_v40 }
 0x929   : > { %3331 = vmatmul.mubr.msk.f32.gmra.mrb[18].mxu1 %vm478_vm5, %v329_v35  ;;  %3509 = vmatprep.subr.bf16.mxu1 %v3508_v51 }
 0x92a   : > { %2850 = vmatprep.mubr.f32.mxu1 %v4256_v60  ;;  %3512 = vmatpush1.bf16.msk.msra.mxu1 %vm5193_vm2, %v3510_v28 }
 0x92b   : > { %3514 = vmatprep.subr.bf16.mxu1 %v3513_v63  ;;  %v335_v63 = vld [vmem:[#allocation5 + $0x118] sm:$0xff] }
 0x92d   : > { %3332 = vmatmul.mubr.msk.f32.gmra.mrb[20].mxu1 %vm478_vm5, %v330_v34 }
 0x92e   : > { %2856 = vmatprep.mubr.f32.mxu1 %v4256_v60 }
 0x931   : > { %3333 = vmatmul.mubr.msk.f32.gmra.mrb[22].mxu1 %vm478_vm5, %v331_v16  ;;  %v3076_v19 = vpop.permute.xlu1 %3075 }
 0x932   : > { %2939 = vmatprep.mubr.f32.mxu1 %v4256_v60 }
 0x933   : > { %v3081_v5 = vpop.permute.xlu0 %3080 }
 0x935   : > { %3338 = vmatmul.mubr.msk.f32.vlgmr.msra.gmra.mrb[16].mxu1 %vm478_vm5, %v324_v38 }
 0x936   : > { %3516 = vmatpush1.bf16.msra.mxu1 %v3515_v9  ;;  %2945 = vmatprep.mubr.f32.mxu1 %v4256_v60  ;;  %v334_v9 = vld [vmem:[#allocation5 + $0x110] sm:$0xff] }
 0x937   : > { %3518 = vmatprep.subr.bf16.mxu1 %v3517_v45  ;;  %v3091_v53 = vpop.permute.xlu0 %3090 }
 0x939   : > { %3339 = vmatmul.mubr.msk.f32.gmra.mrb[18].mxu1 %vm478_vm5, %v325_v41 }
 0x93a   : > { %3520 = vmatpush1.bf16.msra.mxu1 %v3519_v61  ;;  %2951 = vmatprep.mubr.f32.mxu1 %v4256_v60 }
 0x93d   : > { %3340 = vmatmul.mubr.msk.f32.gmra.mrb[20].mxu1 %vm478_vm5, %v326_v6 }
 0x93e   : > { %2957 = vmatprep.mubr.f32.mxu1 %v4256_v60 }
 0x941   : > { %3341 = vmatmul.mubr.msk.f32.gmra.mrb[22].mxu1 %vm478_vm5, %v327_v4 }
 0x942   : > { %3040 = vmatprep.mubr.f32.mxu1 %v4256_v60 }
 0x945   : > { %3342 = vmatmul.mubr.msk.f32.vlgmr.msra.gmra.mrb[16].mxu1 %vm478_vm5, %v332_v59 }
 0x946   : > { %3046 = vmatprep.mubr.f32.mxu1 %v4256_v60 }
 0x949   : > { %3343 = vmatmul.mubr.msk.f32.gmra.mrb[18].mxu1 %vm478_vm5, %v333_v0 }
 0x94a   : > { %3052 = vmatprep.mubr.f32.mxu1 %v4256_v60 }
 0x94d   : > { %3344 = vmatmul.mubr.msk.f32.gmra.mrb[20].mxu1 %vm478_vm5, %v334_v9 }
 0x94e   : > { %3058 = vmatprep.mubr.f32.mxu1 %v4256_v60 }
 0x951   : > { %3345 = vmatmul.mubr.msk.f32.gmra.mrb[22].mxu1 %vm478_vm5, %v335_v63 }
 0xa18   : > { %v3042_v21 = vpop.f32.mrb[16].mxu1 }
 0xa19   : > { %v3093_v61 = vadd.f32 %v3076_v19, %v3042_v21  ;;  %v3044_v37 = vpop.f32.mrb[17].mxu1 }
 0xa1a   : > { %v3094_v24 = vadd.f32 %v3076_v19, %v3044_v37 }
 0xa1b   : > { %v3101_v45 = vadd.f32 %v3093_v61, %v5066_v58  ;;  %v3086_v58 = vpop.permute.xlu1 %3085 }
 0xa1c   : > { %v3102_v3 = vadd.f32 %v3094_v24, %v5069_v11  ;;  %v3048_v13 = vpop.f32.mrb[18].mxu1 }
 0xa1d   : > { %3109 = vst [vmem:[%s5392_s7] sm:$0xff] %v3101_v45  ;;  %v3095_v60 = vadd.f32 %v3081_v5, %v3048_v13  ;;  %v3050_v15 = vpop.f32.mrb[19].mxu1 }
 0xa1e   : > { %3110 = vst [vmem:[%s5392_s7 + $0x8] sm:$0xff] %v3102_v3  ;;  %v3096_v43 = vadd.f32 %v3081_v5, %v3050_v15 }
 0xa1f   : > { %v3103_v52 = vadd.f32 %v3095_v60, %v5074_v27 }
 0xa20   : > { %v3104_v11 = vadd.f32 %v3096_v43, %v5077_v55  ;;  %v3054_v56 = vpop.f32.mrb[20].mxu1 }
 0xa21   : > { %3111 = vst [vmem:[%s5392_s7 + $0x10] sm:$0xff] %v3103_v52  ;;  %v3097_v10 = vadd.f32 %v3086_v58, %v3054_v56  ;;  %v3056_v62 = vpop.f32.mrb[21].mxu1 }
 0xa22   : > { %3112 = vst [vmem:[%s5392_s7 + $0x18] sm:$0xff] %v3104_v11  ;;  %v3098_v26 = vadd.f32 %v3086_v58, %v3056_v62 }
 0xa23   : > { %v3105_v14 = vadd.f32 %v3097_v10, %v5082_v22 }
 0xa24   : > { %v3106_v27 = vadd.f32 %v3098_v26, %v5085_v32  ;;  %v3060_v29 = vpop.f32.mrb[22].mxu1 }
 0xa25   : > { %3113 = vst [vmem:[%s5392_s7 + $0x20] sm:$0xff] %v3105_v14  ;;  %v3099_v55 = vadd.f32 %v3091_v53, %v3060_v29  ;;  %v3062_v42 = vpop.f32.mrb[23].mxu1 }
 0xa26   : > { %3114 = vst [vmem:[%s5392_s7 + $0x28] sm:$0xff] %v3106_v27  ;;  %v3100_v54 = vadd.f32 %v3091_v53, %v3062_v42 }
 0xa27   : > { %v3107_v22 = vadd.f32 %v3099_v55, %v5090_v12 }
 0xa28   : > { %v3108_v18 = vadd.f32 %v3100_v54, %v5093_v36 }
 0xa29   : > { %3115 = vst [vmem:[%s5392_s7 + $0x30] sm:$0xff] %v3107_v22 }
 0xa2a   : > { %3116 = vst [vmem:[%s5392_s7 + $0x38] sm:$0xff] %v3108_v18 }
 0xa2b   : > { %4192 = shalt.err (!%p4189_p11)
}
 0xa2c   : > { %s4193_s11 = scalar_lea.hbm %s5413_s25, 1024  ;;  %s4197_s16 = scalar_lea.hbm %s5465_s5, 2048 }
 0xa2d   : > { %p4194_p13 = scmp.ne.s32.totalorder %s5413_s25, %s4193_s11  ;;  %p4198_p6 = scmp.lt.u32.totalorder %s5413_s25, %s5465_s5 }
 0xa2e   : > { %p4199_p9 = scmp.lt.u32.totalorder %s4197_s16, %s4193_s11  ;;  %p4201_p12 = scmp.lt.u32.totalorder %s4193_s11, %s5413_s25 }
 0xa2f   : > { %p4195_p5 = pnand %p4194_p13, %p5490_p1 }
 0xa30   : > { %p4200_p10 = por %p4199_p9, %p4198_p6 }
 0xa31   : > { %p4196_p0 = pneg %p4195_p5 }
 0xa32   : > { %p4202_p2 = por %p4201_p12, %p4200_p10 }
 0xa34   : > { %p4203_p3 = pnand %p4202_p2, %p4196_p0 }
 0xa36   : > { %4206 = shalt.err (!%p4203_p3)
}
 0xa37   : > { %s4264_s7 = smov 256   ;;  %s4265_s6 = smov 16  }
 0xa38   : > { %3625 = dma.vmem_to_hbm [thread:$0]  (%p5490_p1), %s5406_s23, 1024, %s5413_s25, %s5419_s22, %s4264_s7, %s4264_s7, %s4265_s6  }
 0xa39 PF: > { %p3642_p4 = scmp.ge.s32.totalorder %s4249_s21, 2  ;;  %s3146_s8 = sand.u32 1, %s4237_s18  }
 0xa3a   : > { %p5491_p7 = scmp.ne.s32.totalorder %s5470_s29, 0  ;;  %s3147_s10 = scalar_lea.sflag [#allocation4], %s3146_s8 }
 0xa3c   : > { %p3635_p8 = pnand %p3642_p4, %p5491_p7 }
 0xa3e   : > { %4232 = dma.done.wait (!%p3635_p8), %s3147_s10, 1024  }
 0xa3f   : > { %4234 = vsyncadd (!%p3635_p8), %s3147_s10, 4294966272  ;;  %p17_p11 = scmp.ge.s32.totalorder %s4321_s24, 4   ;;  %s5492_s18 = smov %s4241_s19 }
 0xa40   : > { %s5493_s19 = smov %s4245_s20  ;;  %s5494_s20 = smov %s4332_s27 }
 0xa41   : > { %s5495_s21 = smov %s4321_s24  ;;  %19 = sbr.rel (!%p17_p11) target bundleno = 5 (0x5), region = 84 }
 0xa48   :  { %3152 = vsyncpa [#allocation3], 1 }
 0xa49   :  { %3154 = vsyncpa [#allocation3 + $0x1], 1 }
 0xa4a   :  { %3155 = vsyncpa [#allocation6], 1 }
 0xa4b   :  { %3156 = vsyncpa [#allocation4], 1 }
 0xa4c   :  { %3158 = vsyncpa [#allocation4 + $0x1], 1 }

</bundles_post_ra>
